<compile_context>
chip_gen: v6e
topology: v6e:2x2x1
jax: 0.10.0
libtpu: 0.0.40
codegen_flags: <defaults>
</compile_context>

<pallas_src>
import functools
import math

import jax
import jax.numpy as jnp
from jax import lax
from jax.experimental import pallas as pl
from jax.experimental.pallas import tpu as pltpu


# ----------------------------- kernel helpers --------------------------------

def _layer_norm(x, gamma, beta, eps=1e-6):
    mean = jnp.mean(x, axis=-1, keepdims=True)
    var = jnp.mean((x - mean) ** 2, axis=-1, keepdims=True)
    return (x - mean) * lax.rsqrt(var + eps) * gamma + beta


def _erf_poly(x):
    # Abramowitz & Stegun 7.1.26, |abs error| <= 1.5e-7.  Avoids relying on an
    # erf lowering rule inside the kernel; only exp/mul/add/where are used.
    a1, a2, a3, a4, a5 = (0.254829592, -0.284496736, 1.421413741,
                          -1.453152027, 1.061405429)
    p = 0.3275911
    ax = jnp.abs(x)
    t = 1.0 / (1.0 + p * ax)
    poly = ((((a5 * t + a4) * t + a3) * t + a2) * t + a1) * t
    y = 1.0 - poly * jnp.exp(-ax * ax)
    return jnp.where(x < 0.0, -y, y)


def _gelu_exact(x):
    # matches torch.nn.functional.gelu (erf form) to ~1e-7 absolute
    return 0.5 * x * (1.0 + _erf_poly(x * jnp.float32(0.7071067811865476)))


# --------------------------------- kernel ------------------------------------

def encoder_layer_kernel(
    x_ref, npm_ref, amask_ref,
    wq_ref, wkv_ref, wfc_ref, w1_ref, b1_ref, w2_ref, vecs_ref,
    out_ref, attn_ref,
    *, n_head, d_k, d_v, bb, L, matmul_dtype, mxu_precision, approx_recip,
):
    f32 = jnp.float32
    x = x_ref[...]          # (bb*L, D) f32 -- bb batch elements stacked on rows
    npm = npm_ref[...]      # (bb*L, 1)
    D = x.shape[-1]

    # packed small vectors: [ln1_g, ln1_b, bfc, ln2_g, ln2_b, b2]
    ln1_g = vecs_ref[0:1]
    ln1_b = vecs_ref[1:2]
    bfc = vecs_ref[2:3]
    ln2_g = vecs_ref[3:4]
    ln2_b = vecs_ref[4:5]
    b2 = vecs_ref[5:6]

    # ---- multi-head self-attention (pre-norm: ONLY q is layer-normed) ----
    q_in = _layer_norm(x, ln1_g, ln1_b)
    q = jnp.dot(q_in.astype(matmul_dtype), wq_ref[...],
                preferred_element_type=f32, precision=mxu_precision)
    kv = jnp.dot(x.astype(matmul_dtype), wkv_ref[...],
                 preferred_element_type=f32, precision=mxu_precision)

    # hoisted scaling + whole-tensor casts (keeps narrow per-head casts out of
    # the loop -- v5e VALU friendliness)
    q = (q * jnp.float32(1.0 / math.sqrt(float(d_k)))).astype(matmul_dtype)
    k = kv[:, : n_head * d_k].astype(matmul_dtype)
    v = kv[:, n_head * d_k:].astype(matmul_dtype)
    wfc = wfc_ref[...]      # (H*d_v, D) in matmul_dtype

    qk_dims = (((1,), (1,)), ((), ()))   # contract d_k axes: q @ k^T, no transpose

    for b in range(bb):                  # static: bb is small (<= B//2 by default)
        r0 = b * L
        masked = amask_ref[b].astype(f32) > 0.0        # (L, L); int8 in HBM
        q_b = q[r0:r0 + L]
        k_b = k[r0:r0 + L]
        v_b = v[r0:r0 + L]
        acc = jnp.zeros((L, D), f32)     # fc-projected context accumulator

        for h in range(n_head):          # static unroll (small H == fori unroll=True)
            qh = q_b[:, h * d_k:(h + 1) * d_k]
            kh = k_b[:, h * d_k:(h + 1) * d_k]
            vh = v_b[:, h * d_v:(h + 1) * d_v]

            s = lax.dot_general(qh, kh, qk_dims,
                                preferred_element_type=f32,
                                precision=mxu_precision)          # (L, L)
            s = jnp.where(masked, jnp.float32(-1e9), s)
            s = s - jnp.max(s, axis=-1, keepdims=True)
            e = jnp.exp(s)
            denom = jnp.sum(e, axis=-1, keepdims=True)
            if approx_recip:
                p = e * pl.reciprocal(denom, approx=True)          # EUP slot
            else:
                p = e / denom

            # attention weights emitted directly in (B, H, L, L) layout:
            # last dim L is the lane axis (lane-dense for realistic L), and
            # no wrapper-side transpose / extra HBM round trip is needed.
            attn_ref[b, h] = p.astype(attn_ref.dtype)

            # fc folded into the head loop: lane-dense (L, D) accumulator
            # instead of a narrow (L, d_v) store into a context slab.
            ctx_h = jnp.dot(p.astype(matmul_dtype), vh,
                            preferred_element_type=f32,
                            precision=mxu_precision)               # (L, d_v)
            acc = acc + jnp.dot(ctx_h.astype(matmul_dtype),
                                wfc[h * d_v:(h + 1) * d_v],
                                preferred_element_type=f32,
                                precision=mxu_precision)           # (L, D)

        # residual + non_pad_mask; stage y in the output VMEM block (it is
        # fully overwritten below, so no extra HBM traffic).
        y_b = (acc + bfc + x[r0:r0 + L]) * npm[r0:r0 + L]
        out_ref[r0:r0 + L] = y_b

    # ---- position-wise feed-forward (pre-norm, exact GELU) on the whole block ----
    y = out_ref[...]
    z = _layer_norm(y, ln2_g, ln2_b)
    h1 = _gelu_exact(jnp.dot(z.astype(matmul_dtype), w1_ref[...],
                             preferred_element_type=f32,
                             precision=mxu_precision) + b1_ref[...])
    z2 = jnp.dot(h1.astype(matmul_dtype), w2_ref[...],
                 preferred_element_type=f32, precision=mxu_precision) + b2
    out_ref[...] = (z2 + y) * npm


# -------------------------------- wrapper -------------------------------------

def encoder_layer(enc_input, non_pad_mask, slf_attn_mask, params, *,
                  n_head, d_k, d_v,
                  matmul_dtype=jnp.float32, attn_dtype=jnp.float32,
                  approx_recip=True, batch_block=None):
    B, L, D = enc_input.shape
    H = n_head
    d_inner = params["w1"].shape[1]

    # default batch_block: largest divisor of B that still leaves >= 2 grid
    # steps, so the "parallel" grid axis can shard across v7x's 2 TensorCores.
    if batch_block is None:
        bb = 1
        for cand in range(max(1, B // 2), 0, -1):
            if B % cand == 0:
                bb = cand
                break
    else:
        bb = batch_block
    assert B % bb == 0, "batch_block must divide B"
    N = bb * L  # rows per grid step

    x2d = enc_input.reshape(B * L, D).astype(jnp.float32)
    npm2d = non_pad_mask.reshape(B * L, 1).astype(jnp.float32)
    amask = slf_attn_mask.astype(jnp.int8)          # 4x less mask DMA than int32

    # fused k/v weight; cast matmul operands once (halves weight DMA in bf16)
    wq = params["wq"].astype(matmul_dtype)
    wkv = jnp.concatenate([params["wk"], params["wv"]], axis=1).astype(matmul_dtype)
    wfc = params["wfc"].astype(matmul_dtype)
    w1 = params["w1"].astype(matmul_dtype)
    w2 = params["w2"].astype(matmul_dtype)
    b1 = params["b1"].astype(jnp.float32)
    vecs = jnp.concatenate(
        [params["ln1_g"], params["ln1_b"], params["bfc"],
         params["ln2_g"], params["ln2_b"], params["b2"]], axis=0
    ).astype(jnp.float32)                           # (6, D)

    # f32 path -> genuinely-f32 MXU passes (tight validation); bf16 -> 1 pass.
    mxu_precision = (lax.Precision.HIGHEST
                     if jnp.dtype(matmul_dtype) == jnp.dtype(jnp.float32)
                     else lax.Precision.DEFAULT)

    def _rep(arr):
        # grid-invariant operand: DMA'd once, single-buffered (Buffered(1))
        # instead of the default 2 buffers -> VMEM saved buys a larger bb.
        return pl.BlockSpec(arr.shape, lambda i, nd=arr.ndim: (0,) * nd,
                            pipeline_mode=pl.Buffered(1))

    in_specs = [
        pl.BlockSpec((N, D), lambda i: (i, 0)),          # x rows
        pl.BlockSpec((N, 1), lambda i: (i, 0)),          # non_pad_mask
        pl.BlockSpec((bb, L, L), lambda i: (i, 0, 0)),   # slf_attn_mask (int8)
        _rep(wq), _rep(wkv), _rep(wfc), _rep(w1), _rep(b1), _rep(w2), _rep(vecs),
    ]
    out_specs = [
        pl.BlockSpec((N, D), lambda i: (i, 0)),              # output rows
        pl.BlockSpec((bb, H, L, L), lambda i: (i, 0, 0, 0)),  # attn (B,H,L,L)
    ]
    out_shape = [
        jax.ShapeDtypeStruct((B * L, D), jnp.float32),
        jax.ShapeDtypeStruct((B, H, L, L), attn_dtype),
    ]

    # explicit per-call VMEM budget (re-derived so a v6e-tuned block size does
    # not silently overrun v7x's smaller VMEM); clamped below v7x physical.
    def nbytes(shape, dtype):
        return math.prod(shape) * jnp.dtype(dtype).itemsize
    est = 0
    est += 2 * nbytes((N, D), jnp.float32)                 # x block (2 bufs)
    est += 2 * nbytes((N, 1), jnp.float32)                 # npm block
    est += 2 * nbytes((bb, L, L), jnp.int8)                # mask block
    est += 2 * nbytes((N, D), jnp.float32)                 # out block
    est += 2 * nbytes((bb, H, L, L), attn_dtype)           # attn block
    for w in (wq, wkv, wfc, w1, b1, w2, vecs):             # single-buffered weights
        est += nbytes(w.shape, w.dtype)
    est += nbytes((N, H * (2 * d_k + d_v)), jnp.float32)   # live q / kv
    est += nbytes((N, d_inner), jnp.float32)               # live h1
    est += 6 * nbytes((L, L), jnp.float32)                 # per-head score tiles
    vmem_limit = int(min(56 * 2 ** 20, max(2 * est, 16 * 2 ** 20)))

    kernel = functools.partial(
        encoder_layer_kernel, n_head=n_head, d_k=d_k, d_v=d_v, bb=bb, L=L,
        matmul_dtype=matmul_dtype, mxu_precision=mxu_precision,
        approx_recip=approx_recip)

    out2d, attn = pl.pallas_call(
        kernel,
        out_shape=out_shape,
        grid_spec=pltpu.PrefetchScalarGridSpec(
            num_scalar_prefetch=0,
            grid=(B // bb,),
            in_specs=in_specs,
            out_specs=out_specs,
        ),
        compiler_params=pltpu.CompilerParams(
            dimension_semantics=("parallel",),
            vmem_limit_bytes=vmem_limit),
    )(x2d, npm2d, amask, wq, wkv, wfc, w1, b1, w2, vecs)

    return out2d.reshape(B, L, D), attn


# ---------------------------- pure-JAX reference -------------------------------

def encoder_layer_ref(enc_input, non_pad_mask, slf_attn_mask, params, *, n_head, d_k, d_v):
    B, L, D = enc_input.shape
    x = enc_input
    residual = x
    q_in = _layer_norm(x, params["ln1_g"], params["ln1_b"])
    q = (q_in @ params["wq"]).reshape(B, L, n_head, d_k).transpose(0, 2, 1, 3)
    k = (x @ params["wk"]).reshape(B, L, n_head, d_k).transpose(0, 2, 1, 3)
    v = (x @ params["wv"]).reshape(B, L, n_head, d_v).transpose(0, 2, 1, 3)
    scores = jnp.einsum("bhqd,bhkd->bhqk", q / (d_k ** 0.5), k)
    scores = jnp.where(slf_attn_mask[:, None] > 0, -1e9, scores)
    attn = jax.nn.softmax(scores, axis=-1)
    out = jnp.einsum("bhqk,bhkd->bhqd", attn, v).transpose(0, 2, 1, 3).reshape(B, L, -1)
    y = out @ params["wfc"] + params["bfc"] + residual
    y = y * non_pad_mask
    resid2 = y
    z = _layer_norm(y, params["ln2_g"], params["ln2_b"])
    h1 = jax.nn.gelu(z @ params["w1"] + params["b1"], approximate=False)
    z2 = h1 @ params["w2"] + params["b2"] + resid2
    z2 = z2 * non_pad_mask
    return z2, attn


# ---------------------------------- main ---------------------------------------

if __name__ == "__main__":
    # true-f32 matmuls for the reference so the exact-path check is tight
    jax.config.update("jax_default_matmul_precision", "highest")

    B, L = 2, 8
    d_model, d_inner = 32, 64
    n_head, d_k, d_v = 4, 8, 8

    key = jax.random.PRNGKey(0)
    keys = jax.random.split(key, 12)

    def xavier(k, fan_in, fan_out):
        limit = (6.0 / (fan_in + fan_out)) ** 0.5
        return jax.random.uniform(k, (fan_in, fan_out), jnp.float32, -limit, limit)

    params = {
        "wq": xavier(keys[0], d_model, n_head * d_k),
        "wk": xavier(keys[1], d_model, n_head * d_k),
        "wv": xavier(keys[2], d_model, n_head * d_v),
        "wfc": xavier(keys[3], n_head * d_v, d_model),
        "bfc": 0.01 * jax.random.normal(keys[4], (1, d_model), jnp.float32),
        "ln1_g": jnp.ones((1, d_model), jnp.float32),
        "ln1_b": jnp.zeros((1, d_model), jnp.float32),
        "w1": xavier(keys[5], d_model, d_inner),
        "b1": 0.01 * jax.random.normal(keys[6], (1, d_inner), jnp.float32),
        "w2": xavier(keys[7], d_inner, d_model),
        "b2": 0.01 * jax.random.normal(keys[8], (1, d_model), jnp.float32),
        "ln2_g": jnp.ones((1, d_model), jnp.float32),
        "ln2_b": jnp.zeros((1, d_model), jnp.float32),
    }

    enc_input = jax.random.normal(keys[9], (B, L, d_model), jnp.float32)

    # non-pad mask: batch 1 has last two positions padded.
    npm = jnp.ones((B, L, 1), jnp.float32)
    npm = npm.at[1, -2:, :].set(0.0)

    # self-attention mask: causal mask OR key-padding mask (1 => masked)
    causal = jnp.triu(jnp.ones((L, L), jnp.int32), k=1)
    key_pad = (npm[:, :, 0] == 0.0).astype(jnp.int32)[:, None, :]             # (B, 1, L)
    slf_attn_mask = jnp.clip(causal[None] + key_pad, 0, 1).astype(jnp.int32)  # (B, L, L)

    out_gold, attn_gold = encoder_layer_ref(enc_input, npm, slf_attn_mask, params,
                                            n_head=n_head, d_k=d_k, d_v=d_v)

    # --- exact path (f32 matmuls, exact softmax divide): tight tolerances ---
    out32, attn32 = encoder_layer(enc_input, npm, slf_attn_mask, params,
                                  n_head=n_head, d_k=d_k, d_v=d_v,
                                  matmul_dtype=jnp.float32, approx_recip=False)
    out32 = jax.block_until_ready(out32)
    attn32 = jax.block_until_ready(attn32)
    assert out32.shape == (B, L, d_model)
    assert attn32.shape == (B, n_head, L, L)
    assert jnp.allclose(out32, out_gold, atol=1e-4, rtol=1e-4)
    assert jnp.allclose(attn32, attn_gold, atol=1e-4, rtol=1e-4)

    # --- optimized path (bf16 at the MXU, approx reciprocal in softmax) ---
    outbf, attnbf = encoder_layer(enc_input, npm, slf_attn_mask, params,
                                  n_head=n_head, d_k=d_k, d_v=d_v,
                                  matmul_dtype=jnp.bfloat16, approx_recip=True)
    outbf = jax.block_until_ready(outbf)
    attnbf = jax.block_until_ready(attnbf)
    assert jnp.allclose(outbf, out_gold, atol=5e-2, rtol=5e-2)
    assert jnp.allclose(attnbf, attn_gold, atol=2.5e-2, rtol=2.5e-2)

    print("KERNEL_OK")
</pallas_src>

<mosaic_0001>
module attributes {stable_mosaic.version = 11 : i64} {
  func.func @encoder_layer_kernel(%arg0: i32, %arg1: memref<8x32xf32, #tpu.memory_space<vmem>>, %arg2: memref<8x1xf32, #tpu.memory_space<vmem>>, %arg3: memref<1x8x8xi8, #tpu.memory_space<vmem>>, %arg4: memref<32x32xf32, #tpu.memory_space<vmem>>, %arg5: memref<32x64xf32, #tpu.memory_space<vmem>>, %arg6: memref<32x32xf32, #tpu.memory_space<vmem>>, %arg7: memref<32x64xf32, #tpu.memory_space<vmem>>, %arg8: memref<1x64xf32, #tpu.memory_space<vmem>>, %arg9: memref<64x32xf32, #tpu.memory_space<vmem>>, %arg10: memref<6x32xf32, #tpu.memory_space<vmem>>, %arg11: memref<8x32xf32, #tpu.memory_space<vmem>>, %arg12: memref<1x4x8x8xf32, #tpu.memory_space<vmem>>) attributes {dimension_semantics = [#tpu.dimension_semantics<parallel>], iteration_bounds = array<i64: 2>, scalar_prefetch = 0 : i64, scratch_operands = 0 : i64, tpu.core_type = #tpu.core_type<tc>, window_params = [{transform_indices = @transform_0, window_bounds = array<i64: 8, 32>}, {transform_indices = @transform_1, window_bounds = array<i64: 8, 1>}, {transform_indices = @transform_2, window_bounds = array<i64: 1, 8, 8>}, {pipeline_mode = #tpu.pipeline_mode<synchronous>, transform_indices = @transform_3, window_bounds = array<i64: 32, 32>}, {pipeline_mode = #tpu.pipeline_mode<synchronous>, transform_indices = @transform_4, window_bounds = array<i64: 32, 64>}, {pipeline_mode = #tpu.pipeline_mode<synchronous>, transform_indices = @transform_5, window_bounds = array<i64: 32, 32>}, {pipeline_mode = #tpu.pipeline_mode<synchronous>, transform_indices = @transform_6, window_bounds = array<i64: 32, 64>}, {pipeline_mode = #tpu.pipeline_mode<synchronous>, transform_indices = @transform_7, window_bounds = array<i64: 1, 64>}, {pipeline_mode = #tpu.pipeline_mode<synchronous>, transform_indices = @transform_8, window_bounds = array<i64: 64, 32>}, {pipeline_mode = #tpu.pipeline_mode<synchronous>, transform_indices = @transform_9, window_bounds = array<i64: 6, 32>}, {transform_indices = @transform_10, window_bounds = array<i64: 8, 32>}, {transform_indices = @transform_11, window_bounds = array<i64: 1, 4, 8, 8>}]} {
    %c0 = arith.constant 0 : index
    %c0_0 = arith.constant 0 : index
    %0 = vector.load %arg1[%c0, %c0_0] : memref<8x32xf32, #tpu.memory_space<vmem>>, vector<8x32xf32>
    %c0_1 = arith.constant 0 : index
    %c0_2 = arith.constant 0 : index
    %1 = vector.load %arg2[%c0_1, %c0_2] : memref<8x1xf32, #tpu.memory_space<vmem>>, vector<8x1xf32>
    %c0_3 = arith.constant 0 : index
    %c0_4 = arith.constant 0 : index
    %2 = vector.load %arg10[%c0_3, %c0_4] : memref<6x32xf32, #tpu.memory_space<vmem>>, vector<1x32xf32>
    %c1 = arith.constant 1 : index
    %c0_5 = arith.constant 0 : index
    %3 = vector.load %arg10[%c1, %c0_5] : memref<6x32xf32, #tpu.memory_space<vmem>>, vector<1x32xf32>
    %c2 = arith.constant 2 : index
    %c0_6 = arith.constant 0 : index
    %4 = vector.load %arg10[%c2, %c0_6] : memref<6x32xf32, #tpu.memory_space<vmem>>, vector<1x32xf32>
    %c3 = arith.constant 3 : index
    %c0_7 = arith.constant 0 : index
    %5 = vector.load %arg10[%c3, %c0_7] : memref<6x32xf32, #tpu.memory_space<vmem>>, vector<1x32xf32>
    %c4 = arith.constant 4 : index
    %c0_8 = arith.constant 0 : index
    %6 = vector.load %arg10[%c4, %c0_8] : memref<6x32xf32, #tpu.memory_space<vmem>>, vector<1x32xf32>
    %c5 = arith.constant 5 : index
    %c0_9 = arith.constant 0 : index
    %7 = vector.load %arg10[%c5, %c0_9] : memref<6x32xf32, #tpu.memory_space<vmem>>, vector<1x32xf32>
    %cst = arith.constant dense<0.000000e+00> : vector<8xf32>
    %8 = vector.multi_reduction <add>, %0, %cst [1] : vector<8x32xf32> to vector<8xf32>
    %9 = vector.shape_cast %8 : vector<8xf32> to vector<8x1xf32>
    %cst_10 = arith.constant 3.200000e+01 : f32
    %10 = vector.broadcast %cst_10 : f32 to vector<8x1xf32>
    %11 = arith.divf %9, %10 : vector<8x1xf32>
    %12 = vector.broadcast %11 : vector<8x1xf32> to vector<8x32xf32>
    %13 = arith.subf %0, %12 : vector<8x32xf32>
    %14 = arith.mulf %13, %13 : vector<8x32xf32>
    %cst_11 = arith.constant dense<0.000000e+00> : vector<8xf32>
    %15 = vector.multi_reduction <add>, %14, %cst_11 [1] : vector<8x32xf32> to vector<8xf32>
    %16 = vector.shape_cast %15 : vector<8xf32> to vector<8x1xf32>
    %cst_12 = arith.constant 3.200000e+01 : f32
    %17 = vector.broadcast %cst_12 : f32 to vector<8x1xf32>
    %18 = arith.divf %16, %17 : vector<8x1xf32>
    %19 = vector.broadcast %11 : vector<8x1xf32> to vector<8x32xf32>
    %20 = arith.subf %0, %19 : vector<8x32xf32>
    %cst_13 = arith.constant 9.99999997E-7 : f32
    %21 = vector.broadcast %cst_13 : f32 to vector<8x1xf32>
    %22 = arith.addf %18, %21 : vector<8x1xf32>
    %23 = math.rsqrt %22 : vector<8x1xf32>
    %24 = vector.broadcast %23 : vector<8x1xf32> to vector<8x32xf32>
    %25 = arith.mulf %20, %24 : vector<8x32xf32>
    %26 = vector.broadcast %2 : vector<1x32xf32> to vector<8x32xf32>
    %27 = arith.mulf %25, %26 : vector<8x32xf32>
    %28 = vector.broadcast %3 : vector<1x32xf32> to vector<8x32xf32>
    %29 = arith.addf %27, %28 : vector<8x32xf32>
    %c0_14 = arith.constant 0 : index
    %c0_15 = arith.constant 0 : index
    %30 = vector.load %arg4[%c0_14, %c0_15] : memref<32x32xf32, #tpu.memory_space<vmem>>, vector<32x32xf32>
    %cst_16 = arith.constant dense<0.000000e+00> : vector<8x32xf32>
    %31 = tpu.matmul %29, %30, %cst_16 {dimension_numbers = #tpu.dot_dimension_numbers<[1], [0], [0], [1], [0, 0, 1, 1], [], []>, precision = #tpu.contract_precision<fp32>} : vector<8x32xf32>, vector<32x32xf32>, vector<8x32xf32> -> vector<8x32xf32>
    %c0_17 = arith.constant 0 : index
    %c0_18 = arith.constant 0 : index
    %32 = vector.load %arg5[%c0_17, %c0_18] : memref<32x64xf32, #tpu.memory_space<vmem>>, vector<32x64xf32>
    %cst_19 = arith.constant dense<0.000000e+00> : vector<8x64xf32>
    %33 = tpu.matmul %0, %32, %cst_19 {dimension_numbers = #tpu.dot_dimension_numbers<[1], [0], [0], [1], [0, 0, 1, 1], [], []>, precision = #tpu.contract_precision<fp32>} : vector<8x32xf32>, vector<32x64xf32>, vector<8x64xf32> -> vector<8x64xf32>
    %cst_20 = arith.constant 0.353553385 : f32
    %34 = vector.broadcast %cst_20 : f32 to vector<8x32xf32>
    %35 = arith.mulf %31, %34 : vector<8x32xf32>
    %36 = vector.extract_strided_slice %33 {offsets = [0, 0], sizes = [8, 32], strides = [1, 1]} : vector<8x64xf32> to vector<8x32xf32>
    %37 = vector.extract_strided_slice %33 {offsets = [0, 32], sizes = [8, 32], strides = [1, 1]} : vector<8x64xf32> to vector<8x32xf32>
    %c0_21 = arith.constant 0 : index
    %c0_22 = arith.constant 0 : index
    %38 = vector.load %arg6[%c0_21, %c0_22] : memref<32x32xf32, #tpu.memory_space<vmem>>, vector<32x32xf32>
    %c0_23 = arith.constant 0 : index
    %c0_24 = arith.constant 0 : index
    %c0_25 = arith.constant 0 : index
    %39 = vector.load %arg3[%c0_23, %c0_24, %c0_25] : memref<1x8x8xi8, #tpu.memory_space<vmem>>, vector<1x8x8xi8>
    %40 = vector.shape_cast %39 : vector<1x8x8xi8> to vector<8x8xi8>
    %41 = arith.sitofp %40 : vector<8x8xi8> to vector<8x8xf32>
    %cst_26 = arith.constant 0.000000e+00 : f32
    %42 = vector.broadcast %cst_26 : f32 to vector<8x8xf32>
    %43 = arith.cmpf ogt, %41, %42 : vector<8x8xf32>
    %cst_27 = arith.constant 0.000000e+00 : f32
    %44 = vector.broadcast %cst_27 : f32 to vector<8x32xf32>
    %45 = vector.extract_strided_slice %35 {offsets = [0, 0], sizes = [8, 8], strides = [1, 1]} : vector<8x32xf32> to vector<8x8xf32>
    %46 = vector.extract_strided_slice %36 {offsets = [0, 0], sizes = [8, 8], strides = [1, 1]} : vector<8x32xf32> to vector<8x8xf32>
    %47 = vector.extract_strided_slice %37 {offsets = [0, 0], sizes = [8, 8], strides = [1, 1]} : vector<8x32xf32> to vector<8x8xf32>
    %cst_28 = arith.constant dense<0.000000e+00> : vector<8x8xf32>
    %48 = tpu.matmul %45, %46, %cst_28 {dimension_numbers = #tpu.dot_dimension_numbers<[1], [1], [0], [0], [0, 0, 1, 0], [], []>, precision = #tpu.contract_precision<fp32>} : vector<8x8xf32>, vector<8x8xf32>, vector<8x8xf32> -> vector<8x8xf32>
    %cst_29 = arith.constant -1.000000e+09 : f32
    %49 = vector.broadcast %cst_29 : f32 to vector<8x8xf32>
    %50 = arith.select %43, %49, %48 : vector<8x8xi1>, vector<8x8xf32>
    %cst_30 = arith.constant dense<0xFF800000> : vector<8xf32>
    %51 = vector.multi_reduction <maximumf>, %50, %cst_30 [1] : vector<8x8xf32> to vector<8xf32>
    %52 = vector.shape_cast %51 : vector<8xf32> to vector<8x1xf32>
    %53 = vector.broadcast %52 : vector<8x1xf32> to vector<8x8xf32>
    %54 = arith.subf %50, %53 : vector<8x8xf32>
    %55 = math.exp %54 : vector<8x8xf32>
    %cst_31 = arith.constant dense<0.000000e+00> : vector<8xf32>
    %56 = vector.multi_reduction <add>, %55, %cst_31 [1] : vector<8x8xf32> to vector<8xf32>
    %57 = vector.shape_cast %56 : vector<8xf32> to vector<8x1xf32>
    %58 = vector.broadcast %57 : vector<8x1xf32> to vector<8x8xf32>
    %59 = arith.divf %55, %58 : vector<8x8xf32>
    %c0_32 = arith.constant 0 : index
    %c0_33 = arith.constant 0 : index
    %c0_34 = arith.constant 0 : index
    %c0_35 = arith.constant 0 : index
    %60 = vector.load %arg12[%c0_32, %c0_33, %c0_34, %c0_35] : memref<1x4x8x8xf32, #tpu.memory_space<vmem>>, vector<1x1x8x8xf32>
    %61 = vector.shape_cast %60 : vector<1x1x8x8xf32> to vector<8x8xf32>
    %62 = vector.shape_cast %59 : vector<8x8xf32> to vector<1x1x8x8xf32>
    tpu.vector_store %arg12[%c0_32, %c0_33, %c0_34, %c0_35], %62 {strides = array<i32>} : memref<1x4x8x8xf32, #tpu.memory_space<vmem>>, vector<1x1x8x8xf32>,
    %cst_36 = arith.constant dense<0.000000e+00> : vector<8x8xf32>
    %63 = tpu.matmul %59, %47, %cst_36 {dimension_numbers = #tpu.dot_dimension_numbers<[1], [0], [0], [1], [0, 0, 1, 1], [], []>, precision = #tpu.contract_precision<fp32>} : vector<8x8xf32>, vector<8x8xf32>, vector<8x8xf32> -> vector<8x8xf32>
    %64 = vector.extract_strided_slice %38 {offsets = [0, 0], sizes = [8, 32], strides = [1, 1]} : vector<32x32xf32> to vector<8x32xf32>
    %cst_37 = arith.constant dense<0.000000e+00> : vector<8x32xf32>
    %65 = tpu.matmul %63, %64, %cst_37 {dimension_numbers = #tpu.dot_dimension_numbers<[1], [0], [0], [1], [0, 0, 1, 1], [], []>, precision = #tpu.contract_precision<fp32>} : vector<8x8xf32>, vector<8x32xf32>, vector<8x32xf32> -> vector<8x32xf32>
    %66 = arith.addf %44, %65 : vector<8x32xf32>
    %67 = vector.extract_strided_slice %35 {offsets = [0, 8], sizes = [8, 8], strides = [1, 1]} : vector<8x32xf32> to vector<8x8xf32>
    %68 = vector.extract_strided_slice %36 {offsets = [0, 8], sizes = [8, 8], strides = [1, 1]} : vector<8x32xf32> to vector<8x8xf32>
    %69 = vector.extract_strided_slice %37 {offsets = [0, 8], sizes = [8, 8], strides = [1, 1]} : vector<8x32xf32> to vector<8x8xf32>
    %cst_38 = arith.constant dense<0.000000e+00> : vector<8x8xf32>
    %70 = tpu.matmul %67, %68, %cst_38 {dimension_numbers = #tpu.dot_dimension_numbers<[1], [1], [0], [0], [0, 0, 1, 0], [], []>, precision = #tpu.contract_precision<fp32>} : vector<8x8xf32>, vector<8x8xf32>, vector<8x8xf32> -> vector<8x8xf32>
    %cst_39 = arith.constant -1.000000e+09 : f32
    %71 = vector.broadcast %cst_39 : f32 to vector<8x8xf32>
    %72 = arith.select %43, %71, %70 : vector<8x8xi1>, vector<8x8xf32>
    %cst_40 = arith.constant dense<0xFF800000> : vector<8xf32>
    %73 = vector.multi_reduction <maximumf>, %72, %cst_40 [1] : vector<8x8xf32> to vector<8xf32>
    %74 = vector.shape_cast %73 : vector<8xf32> to vector<8x1xf32>
    %75 = vector.broadcast %74 : vector<8x1xf32> to vector<8x8xf32>
    %76 = arith.subf %72, %75 : vector<8x8xf32>
    %77 = math.exp %76 : vector<8x8xf32>
    %cst_41 = arith.constant dense<0.000000e+00> : vector<8xf32>
    %78 = vector.multi_reduction <add>, %77, %cst_41 [1] : vector<8x8xf32> to vector<8xf32>
    %79 = vector.shape_cast %78 : vector<8xf32> to vector<8x1xf32>
    %80 = vector.broadcast %79 : vector<8x1xf32> to vector<8x8xf32>
    %81 = arith.divf %77, %80 : vector<8x8xf32>
    %c0_42 = arith.constant 0 : index
    %c1_43 = arith.constant 1 : index
    %c0_44 = arith.constant 0 : index
    %c0_45 = arith.constant 0 : index
    %82 = vector.load %arg12[%c0_42, %c1_43, %c0_44, %c0_45] : memref<1x4x8x8xf32, #tpu.memory_space<vmem>>, vector<1x1x8x8xf32>
    %83 = vector.shape_cast %82 : vector<1x1x8x8xf32> to vector<8x8xf32>
    %84 = vector.shape_cast %81 : vector<8x8xf32> to vector<1x1x8x8xf32>
    tpu.vector_store %arg12[%c0_42, %c1_43, %c0_44, %c0_45], %84 {strides = array<i32>} : memref<1x4x8x8xf32, #tpu.memory_space<vmem>>, vector<1x1x8x8xf32>,
    %cst_46 = arith.constant dense<0.000000e+00> : vector<8x8xf32>
    %85 = tpu.matmul %81, %69, %cst_46 {dimension_numbers = #tpu.dot_dimension_numbers<[1], [0], [0], [1], [0, 0, 1, 1], [], []>, precision = #tpu.contract_precision<fp32>} : vector<8x8xf32>, vector<8x8xf32>, vector<8x8xf32> -> vector<8x8xf32>
    %86 = vector.extract_strided_slice %38 {offsets = [8, 0], sizes = [8, 32], strides = [1, 1]} : vector<32x32xf32> to vector<8x32xf32>
    %cst_47 = arith.constant dense<0.000000e+00> : vector<8x32xf32>
    %87 = tpu.matmul %85, %86, %cst_47 {dimension_numbers = #tpu.dot_dimension_numbers<[1], [0], [0], [1], [0, 0, 1, 1], [], []>, precision = #tpu.contract_precision<fp32>} : vector<8x8xf32>, vector<8x32xf32>, vector<8x32xf32> -> vector<8x32xf32>
    %88 = arith.addf %66, %87 : vector<8x32xf32>
    %89 = vector.extract_strided_slice %35 {offsets = [0, 16], sizes = [8, 8], strides = [1, 1]} : vector<8x32xf32> to vector<8x8xf32>
    %90 = vector.extract_strided_slice %36 {offsets = [0, 16], sizes = [8, 8], strides = [1, 1]} : vector<8x32xf32> to vector<8x8xf32>
    %91 = vector.extract_strided_slice %37 {offsets = [0, 16], sizes = [8, 8], strides = [1, 1]} : vector<8x32xf32> to vector<8x8xf32>
    %cst_48 = arith.constant dense<0.000000e+00> : vector<8x8xf32>
    %92 = tpu.matmul %89, %90, %cst_48 {dimension_numbers = #tpu.dot_dimension_numbers<[1], [1], [0], [0], [0, 0, 1, 0], [], []>, precision = #tpu.contract_precision<fp32>} : vector<8x8xf32>, vector<8x8xf32>, vector<8x8xf32> -> vector<8x8xf32>
    %cst_49 = arith.constant -1.000000e+09 : f32
    %93 = vector.broadcast %cst_49 : f32 to vector<8x8xf32>
    %94 = arith.select %43, %93, %92 : vector<8x8xi1>, vector<8x8xf32>
    %cst_50 = arith.constant dense<0xFF800000> : vector<8xf32>
    %95 = vector.multi_reduction <maximumf>, %94, %cst_50 [1] : vector<8x8xf32> to vector<8xf32>
    %96 = vector.shape_cast %95 : vector<8xf32> to vector<8x1xf32>
    %97 = vector.broadcast %96 : vector<8x1xf32> to vector<8x8xf32>
    %98 = arith.subf %94, %97 : vector<8x8xf32>
    %99 = math.exp %98 : vector<8x8xf32>
    %cst_51 = arith.constant dense<0.000000e+00> : vector<8xf32>
    %100 = vector.multi_reduction <add>, %99, %cst_51 [1] : vector<8x8xf32> to vector<8xf32>
    %101 = vector.shape_cast %100 : vector<8xf32> to vector<8x1xf32>
    %102 = vector.broadcast %101 : vector<8x1xf32> to vector<8x8xf32>
    %103 = arith.divf %99, %102 : vector<8x8xf32>
    %c0_52 = arith.constant 0 : index
    %c2_53 = arith.constant 2 : index
    %c0_54 = arith.constant 0 : index
    %c0_55 = arith.constant 0 : index
    %104 = vector.load %arg12[%c0_52, %c2_53, %c0_54, %c0_55] : memref<1x4x8x8xf32, #tpu.memory_space<vmem>>, vector<1x1x8x8xf32>
    %105 = vector.shape_cast %104 : vector<1x1x8x8xf32> to vector<8x8xf32>
    %106 = vector.shape_cast %103 : vector<8x8xf32> to vector<1x1x8x8xf32>
    tpu.vector_store %arg12[%c0_52, %c2_53, %c0_54, %c0_55], %106 {strides = array<i32>} : memref<1x4x8x8xf32, #tpu.memory_space<vmem>>, vector<1x1x8x8xf32>,
    %cst_56 = arith.constant dense<0.000000e+00> : vector<8x8xf32>
    %107 = tpu.matmul %103, %91, %cst_56 {dimension_numbers = #tpu.dot_dimension_numbers<[1], [0], [0], [1], [0, 0, 1, 1], [], []>, precision = #tpu.contract_precision<fp32>} : vector<8x8xf32>, vector<8x8xf32>, vector<8x8xf32> -> vector<8x8xf32>
    %108 = vector.extract_strided_slice %38 {offsets = [16, 0], sizes = [8, 32], strides = [1, 1]} : vector<32x32xf32> to vector<8x32xf32>
    %cst_57 = arith.constant dense<0.000000e+00> : vector<8x32xf32>
    %109 = tpu.matmul %107, %108, %cst_57 {dimension_numbers = #tpu.dot_dimension_numbers<[1], [0], [0], [1], [0, 0, 1, 1], [], []>, precision = #tpu.contract_precision<fp32>} : vector<8x8xf32>, vector<8x32xf32>, vector<8x32xf32> -> vector<8x32xf32>
    %110 = arith.addf %88, %109 : vector<8x32xf32>
    %111 = vector.extract_strided_slice %35 {offsets = [0, 24], sizes = [8, 8], strides = [1, 1]} : vector<8x32xf32> to vector<8x8xf32>
    %112 = vector.extract_strided_slice %36 {offsets = [0, 24], sizes = [8, 8], strides = [1, 1]} : vector<8x32xf32> to vector<8x8xf32>
    %113 = vector.extract_strided_slice %37 {offsets = [0, 24], sizes = [8, 8], strides = [1, 1]} : vector<8x32xf32> to vector<8x8xf32>
    %cst_58 = arith.constant dense<0.000000e+00> : vector<8x8xf32>
    %114 = tpu.matmul %111, %112, %cst_58 {dimension_numbers = #tpu.dot_dimension_numbers<[1], [1], [0], [0], [0, 0, 1, 0], [], []>, precision = #tpu.contract_precision<fp32>} : vector<8x8xf32>, vector<8x8xf32>, vector<8x8xf32> -> vector<8x8xf32>
    %cst_59 = arith.constant -1.000000e+09 : f32
    %115 = vector.broadcast %cst_59 : f32 to vector<8x8xf32>
    %116 = arith.select %43, %115, %114 : vector<8x8xi1>, vector<8x8xf32>
    %cst_60 = arith.constant dense<0xFF800000> : vector<8xf32>
    %117 = vector.multi_reduction <maximumf>, %116, %cst_60 [1] : vector<8x8xf32> to vector<8xf32>
    %118 = vector.shape_cast %117 : vector<8xf32> to vector<8x1xf32>
    %119 = vector.broadcast %118 : vector<8x1xf32> to vector<8x8xf32>
    %120 = arith.subf %116, %119 : vector<8x8xf32>
    %121 = math.exp %120 : vector<8x8xf32>
    %cst_61 = arith.constant dense<0.000000e+00> : vector<8xf32>
    %122 = vector.multi_reduction <add>, %121, %cst_61 [1] : vector<8x8xf32> to vector<8xf32>
    %123 = vector.shape_cast %122 : vector<8xf32> to vector<8x1xf32>
    %124 = vector.broadcast %123 : vector<8x1xf32> to vector<8x8xf32>
    %125 = arith.divf %121, %124 : vector<8x8xf32>
    %c0_62 = arith.constant 0 : index
    %c3_63 = arith.constant 3 : index
    %c0_64 = arith.constant 0 : index
    %c0_65 = arith.constant 0 : index
    %126 = vector.load %arg12[%c0_62, %c3_63, %c0_64, %c0_65] : memref<1x4x8x8xf32, #tpu.memory_space<vmem>>, vector<1x1x8x8xf32>
    %127 = vector.shape_cast %126 : vector<1x1x8x8xf32> to vector<8x8xf32>
    %128 = vector.shape_cast %125 : vector<8x8xf32> to vector<1x1x8x8xf32>
    tpu.vector_store %arg12[%c0_62, %c3_63, %c0_64, %c0_65], %128 {strides = array<i32>} : memref<1x4x8x8xf32, #tpu.memory_space<vmem>>, vector<1x1x8x8xf32>,
    %cst_66 = arith.constant dense<0.000000e+00> : vector<8x8xf32>
    %129 = tpu.matmul %125, %113, %cst_66 {dimension_numbers = #tpu.dot_dimension_numbers<[1], [0], [0], [1], [0, 0, 1, 1], [], []>, precision = #tpu.contract_precision<fp32>} : vector<8x8xf32>, vector<8x8xf32>, vector<8x8xf32> -> vector<8x8xf32>
    %130 = vector.extract_strided_slice %38 {offsets = [24, 0], sizes = [8, 32], strides = [1, 1]} : vector<32x32xf32> to vector<8x32xf32>
    %cst_67 = arith.constant dense<0.000000e+00> : vector<8x32xf32>
    %131 = tpu.matmul %129, %130, %cst_67 {dimension_numbers = #tpu.dot_dimension_numbers<[1], [0], [0], [1], [0, 0, 1, 1], [], []>, precision = #tpu.contract_precision<fp32>} : vector<8x8xf32>, vector<8x32xf32>, vector<8x32xf32> -> vector<8x32xf32>
    %132 = arith.addf %110, %131 : vector<8x32xf32>
    %133 = vector.broadcast %4 : vector<1x32xf32> to vector<8x32xf32>
    %134 = arith.addf %132, %133 : vector<8x32xf32>
    %135 = arith.addf %134, %0 : vector<8x32xf32>
    %136 = vector.broadcast %1 : vector<8x1xf32> to vector<8x32xf32>
    %137 = arith.mulf %135, %136 : vector<8x32xf32>
    %c0_68 = arith.constant 0 : index
    %c0_69 = arith.constant 0 : index
    %138 = vector.load %arg11[%c0_68, %c0_69] : memref<8x32xf32, #tpu.memory_space<vmem>>, vector<8x32xf32>
    tpu.vector_store %arg11[%c0_68, %c0_69], %137 {strides = array<i32>} : memref<8x32xf32, #tpu.memory_space<vmem>>, vector<8x32xf32>,
    %c0_70 = arith.constant 0 : index
    %c0_71 = arith.constant 0 : index
    %139 = vector.load %arg11[%c0_70, %c0_71] : memref<8x32xf32, #tpu.memory_space<vmem>>, vector<8x32xf32>
    %cst_72 = arith.constant dense<0.000000e+00> : vector<8xf32>
    %140 = vector.multi_reduction <add>, %139, %cst_72 [1] : vector<8x32xf32> to vector<8xf32>
    %141 = vector.shape_cast %140 : vector<8xf32> to vector<8x1xf32>
    %cst_73 = arith.constant 3.200000e+01 : f32
    %142 = vector.broadcast %cst_73 : f32 to vector<8x1xf32>
    %143 = arith.divf %141, %142 : vector<8x1xf32>
    %144 = vector.broadcast %143 : vector<8x1xf32> to vector<8x32xf32>
    %145 = arith.subf %139, %144 : vector<8x32xf32>
    %146 = arith.mulf %145, %145 : vector<8x32xf32>
    %cst_74 = arith.constant dense<0.000000e+00> : vector<8xf32>
    %147 = vector.multi_reduction <add>, %146, %cst_74 [1] : vector<8x32xf32> to vector<8xf32>
    %148 = vector.shape_cast %147 : vector<8xf32> to vector<8x1xf32>
    %cst_75 = arith.constant 3.200000e+01 : f32
    %149 = vector.broadcast %cst_75 : f32 to vector<8x1xf32>
    %150 = arith.divf %148, %149 : vector<8x1xf32>
    %151 = vector.broadcast %143 : vector<8x1xf32> to vector<8x32xf32>
    %152 = arith.subf %139, %151 : vector<8x32xf32>
    %cst_76 = arith.constant 9.99999997E-7 : f32
    %153 = vector.broadcast %cst_76 : f32 to vector<8x1xf32>
    %154 = arith.addf %150, %153 : vector<8x1xf32>
    %155 = math.rsqrt %154 : vector<8x1xf32>
    %156 = vector.broadcast %155 : vector<8x1xf32> to vector<8x32xf32>
    %157 = arith.mulf %152, %156 : vector<8x32xf32>
    %158 = vector.broadcast %5 : vector<1x32xf32> to vector<8x32xf32>
    %159 = arith.mulf %157, %158 : vector<8x32xf32>
    %160 = vector.broadcast %6 : vector<1x32xf32> to vector<8x32xf32>
    %161 = arith.addf %159, %160 : vector<8x32xf32>
    %c0_77 = arith.constant 0 : index
    %c0_78 = arith.constant 0 : index
    %162 = vector.load %arg7[%c0_77, %c0_78] : memref<32x64xf32, #tpu.memory_space<vmem>>, vector<32x64xf32>
    %cst_79 = arith.constant dense<0.000000e+00> : vector<8x64xf32>
    %163 = tpu.matmul %161, %162, %cst_79 {dimension_numbers = #tpu.dot_dimension_numbers<[1], [0], [0], [1], [0, 0, 1, 1], [], []>, precision = #tpu.contract_precision<fp32>} : vector<8x32xf32>, vector<32x64xf32>, vector<8x64xf32> -> vector<8x64xf32>
    %c0_80 = arith.constant 0 : index
    %c0_81 = arith.constant 0 : index
    %164 = vector.load %arg8[%c0_80, %c0_81] : memref<1x64xf32, #tpu.memory_space<vmem>>, vector<1x64xf32>
    %165 = vector.broadcast %164 : vector<1x64xf32> to vector<8x64xf32>
    %166 = arith.addf %163, %165 : vector<8x64xf32>
    %cst_82 = arith.constant 5.000000e-01 : f32
    %167 = vector.broadcast %cst_82 : f32 to vector<8x64xf32>
    %168 = arith.mulf %167, %166 : vector<8x64xf32>
    %cst_83 = arith.constant 0.707106769 : f32
    %169 = vector.broadcast %cst_83 : f32 to vector<8x64xf32>
    %170 = arith.mulf %166, %169 : vector<8x64xf32>
    %171 = math.absf %170 : vector<8x64xf32>
    %cst_84 = arith.constant 0.327591091 : f32
    %172 = vector.broadcast %cst_84 : f32 to vector<8x64xf32>
    %173 = arith.mulf %172, %171 : vector<8x64xf32>
    %cst_85 = arith.constant 1.000000e+00 : f32
    %174 = vector.broadcast %cst_85 : f32 to vector<8x64xf32>
    %175 = arith.addf %174, %173 : vector<8x64xf32>
    %cst_86 = arith.constant 1.000000e+00 : f32
    %176 = vector.broadcast %cst_86 : f32 to vector<8x64xf32>
    %177 = arith.divf %176, %175 : vector<8x64xf32>
    %cst_87 = arith.constant 1.06140542 : f32
    %178 = vector.broadcast %cst_87 : f32 to vector<8x64xf32>
    %179 = arith.mulf %178, %177 : vector<8x64xf32>
    %cst_88 = arith.constant -1.45315206 : f32
    %180 = vector.broadcast %cst_88 : f32 to vector<8x64xf32>
    %181 = arith.addf %179, %180 : vector<8x64xf32>
    %182 = arith.mulf %181, %177 : vector<8x64xf32>
    %cst_89 = arith.constant 1.42141378 : f32
    %183 = vector.broadcast %cst_89 : f32 to vector<8x64xf32>
    %184 = arith.addf %182, %183 : vector<8x64xf32>
    %185 = arith.mulf %184, %177 : vector<8x64xf32>
    %cst_90 = arith.constant -0.284496725 : f32
    %186 = vector.broadcast %cst_90 : f32 to vector<8x64xf32>
    %187 = arith.addf %185, %186 : vector<8x64xf32>
    %188 = arith.mulf %187, %177 : vector<8x64xf32>
    %cst_91 = arith.constant 0.254829586 : f32
    %189 = vector.broadcast %cst_91 : f32 to vector<8x64xf32>
    %190 = arith.addf %188, %189 : vector<8x64xf32>
    %191 = arith.mulf %190, %177 : vector<8x64xf32>
    %cst_92 = arith.constant 0.000000e+00 : f32
    %192 = vector.broadcast %cst_92 : f32 to vector<8x64xf32>
    %193 = arith.subf %192, %171 : vector<8x64xf32>
    %194 = arith.mulf %193, %171 : vector<8x64xf32>
    %195 = math.exp %194 : vector<8x64xf32>
    %196 = arith.mulf %191, %195 : vector<8x64xf32>
    %cst_93 = arith.constant 1.000000e+00 : f32
    %197 = vector.broadcast %cst_93 : f32 to vector<8x64xf32>
    %198 = arith.subf %197, %196 : vector<8x64xf32>
    %cst_94 = arith.constant 0.000000e+00 : f32
    %199 = vector.broadcast %cst_94 : f32 to vector<8x64xf32>
    %200 = arith.cmpf olt, %170, %199 : vector<8x64xf32>
    %cst_95 = arith.constant 0.000000e+00 : f32
    %201 = vector.broadcast %cst_95 : f32 to vector<8x64xf32>
    %202 = arith.subf %201, %198 : vector<8x64xf32>
    %203 = arith.select %200, %202, %198 : vector<8x64xi1>, vector<8x64xf32>
    %cst_96 = arith.constant 1.000000e+00 : f32
    %204 = vector.broadcast %cst_96 : f32 to vector<8x64xf32>
    %205 = arith.addf %204, %203 : vector<8x64xf32>
    %206 = arith.mulf %168, %205 : vector<8x64xf32>
    %c0_97 = arith.constant 0 : index
    %c0_98 = arith.constant 0 : index
    %207 = vector.load %arg9[%c0_97, %c0_98] : memref<64x32xf32, #tpu.memory_space<vmem>>, vector<64x32xf32>
    %cst_99 = arith.constant dense<0.000000e+00> : vector<8x32xf32>
    %208 = tpu.matmul %206, %207, %cst_99 {dimension_numbers = #tpu.dot_dimension_numbers<[1], [0], [0], [1], [0, 0, 1, 1], [], []>, precision = #tpu.contract_precision<fp32>} : vector<8x64xf32>, vector<64x32xf32>, vector<8x32xf32> -> vector<8x32xf32>
    %209 = vector.broadcast %7 : vector<1x32xf32> to vector<8x32xf32>
    %210 = arith.addf %208, %209 : vector<8x32xf32>
    %211 = arith.addf %210, %139 : vector<8x32xf32>
    %212 = vector.broadcast %1 : vector<8x1xf32> to vector<8x32xf32>
    %213 = arith.mulf %211, %212 : vector<8x32xf32>
    %c0_100 = arith.constant 0 : index
    %c0_101 = arith.constant 0 : index
    %214 = vector.load %arg11[%c0_100, %c0_101] : memref<8x32xf32, #tpu.memory_space<vmem>>, vector<8x32xf32>
    tpu.vector_store %arg11[%c0_100, %c0_101], %213 {strides = array<i32>} : memref<8x32xf32, #tpu.memory_space<vmem>>, vector<8x32xf32>,
    return
  }
  func.func @transform_0(%arg0: i32) -> (i32, i32) {
    %c0_i32 = arith.constant 0 : i32
    %c0_i32_0 = arith.constant 0 : i32
    return %arg0, %c0_i32 : i32, i32
  }
  func.func @transform_1(%arg0: i32) -> (i32, i32) {
    %c0_i32 = arith.constant 0 : i32
    %c0_i32_0 = arith.constant 0 : i32
    return %arg0, %c0_i32 : i32, i32
  }
  func.func @transform_2(%arg0: i32) -> (i32, i32, i32) {
    %c0_i32 = arith.constant 0 : i32
    %c0_i32_0 = arith.constant 0 : i32
    %c0_i32_1 = arith.constant 0 : i32
    return %arg0, %c0_i32, %c0_i32_0 : i32, i32, i32
  }
  func.func @transform_3(%arg0: i32) -> (i32, i32) {
    %c0_i32 = arith.constant 0 : i32
    %c0_i32_0 = arith.constant 0 : i32
    %c0_i32_1 = arith.constant 0 : i32
    return %c0_i32, %c0_i32_0 : i32, i32
  }
  func.func @transform_4(%arg0: i32) -> (i32, i32) {
    %c0_i32 = arith.constant 0 : i32
    %c0_i32_0 = arith.constant 0 : i32
    %c0_i32_1 = arith.constant 0 : i32
    return %c0_i32, %c0_i32_0 : i32, i32
  }
  func.func @transform_5(%arg0: i32) -> (i32, i32) {
    %c0_i32 = arith.constant 0 : i32
    %c0_i32_0 = arith.constant 0 : i32
    %c0_i32_1 = arith.constant 0 : i32
    return %c0_i32, %c0_i32_0 : i32, i32
  }
  func.func @transform_6(%arg0: i32) -> (i32, i32) {
    %c0_i32 = arith.constant 0 : i32
    %c0_i32_0 = arith.constant 0 : i32
    %c0_i32_1 = arith.constant 0 : i32
    return %c0_i32, %c0_i32_0 : i32, i32
  }
  func.func @transform_7(%arg0: i32) -> (i32, i32) {
    %c0_i32 = arith.constant 0 : i32
    %c0_i32_0 = arith.constant 0 : i32
    %c0_i32_1 = arith.constant 0 : i32
    return %c0_i32, %c0_i32_0 : i32, i32
  }
  func.func @transform_8(%arg0: i32) -> (i32, i32) {
    %c0_i32 = arith.constant 0 : i32
    %c0_i32_0 = arith.constant 0 : i32
    %c0_i32_1 = arith.constant 0 : i32
    return %c0_i32, %c0_i32_0 : i32, i32
  }
  func.func @transform_9(%arg0: i32) -> (i32, i32) {
    %c0_i32 = arith.constant 0 : i32
    %c0_i32_0 = arith.constant 0 : i32
    %c0_i32_1 = arith.constant 0 : i32
    return %c0_i32, %c0_i32_0 : i32, i32
  }
  func.func @transform_10(%arg0: i32) -> (i32, i32) {
    %c0_i32 = arith.constant 0 : i32
    %c0_i32_0 = arith.constant 0 : i32
    return %arg0, %c0_i32 : i32, i32
  }
  func.func @transform_11(%arg0: i32) -> (i32, i32, i32, i32) {
    %c0_i32 = arith.constant 0 : i32
    %c0_i32_0 = arith.constant 0 : i32
    %c0_i32_1 = arith.constant 0 : i32
    %c0_i32_2 = arith.constant 0 : i32
    return %arg0, %c0_i32, %c0_i32_0, %c0_i32_1 : i32, i32, i32, i32
  }
}

</mosaic_0001>

<bundles_post_ra>
// kernel: tpu_custom_call.1
= control target key start
LH: loop header
LB: loop body
LE: loop exit
PB: predicated region body
PF: predicated region fallthrough
CT: control target
= control target key end

     0   :  { %s10718_s0 = inlined_call_operand.vmem [shape: f32[16,32], index: 0, kind: input, shape index: {}]   ;;  %s10719_s1 = inlined_call_operand.vmem [shape: f32[16,1], index: 1, kind: input, shape index: {}]   ;;  %s10720_s2 = inlined_call_operand.hbm [shape: s8[2,8,8], index: 2, kind: input, shape index: {}]   ;;  %s10721_s3 = inlined_call_operand.vmem [shape: f32[32,32], index: 3, kind: input, shape index: {}]   ;;  %s10722_s4 = inlined_call_operand.vmem [shape: f32[32,64], index: 4, kind: input, shape index: {}]   ;;  %s10723_s5 = inlined_call_operand.vmem [shape: f32[32,32], index: 5, kind: input, shape index: {}]   ;;  %s10724_s6 = inlined_call_operand.hbm [shape: f32[32,64], index: 6, kind: input, shape index: {}]   ;;  %s10725_s7 = inlined_call_operand.vmem [shape: f32[1,64], index: 7, kind: input, shape index: {}]   ;;  %s10726_s8 = inlined_call_operand.vmem [shape: f32[64,32], index: 8, kind: input, shape index: {}]   ;;  %s10727_s9 = inlined_call_operand.vmem [shape: f32[6,32], index: 9, kind: input, shape index: {}]   ;;  %s10728_s10 = inlined_call_operand.hbm [shape: f32[16,32], index: 10, kind: output, shape index: {0}]   ;;  %s10729_s11 = inlined_call_operand.hbm [shape: f32[2,4,8,8], index: 11, kind: output, shape index: {1}]  }
   0x1   :  { %10739 = sst [smem:[#allocation18_spill]] %s10724_s6 }
   0x2   :  { %10740 = sst [smem:[#allocation19_spill]] %s10728_s10 }
   0x3   :  { %17 = vsyncpa [#allocation3], 0 }
   0x4   :  { %19 = vsyncpa [#allocation3 + $0x1], 0 }
   0x5   :  { %20 = vsyncpa [#allocation6], 0 }
   0x6   :  { %21 = vsyncpa [#allocation4], 0 }
   0x7   :  { %23 = vsyncpa [#allocation4 + $0x1], 0 }
   0x8   :  { %24 = vsyncpa [#allocation9], 0 }
   0x9   :  { %26 = vsyncpa [#allocation9 + $0x1], 0  ;;  %s9580_s17 = smov 0   ;;  %s9582_s18 = smov 0  }
   0xa   :  { %s9584_s19 = smov 0   ;;  %s9586_s20 = smov 0  }
   0xb LB: > { %10741 = sst [smem:[#allocation14_spill]] %s9488_s17  ;;  %s9601_s21 = sadd.s32 4294967295, %s9500_s20   ;;  %s9500_s20 = sphi %s9586_s20, %s10763_s20   ;;  %s9496_s19 = sphi %s9584_s19, %s10767_s19   ;;  %s9492_s18 = sphi %s9582_s18, %s10766_s18   ;;  %s9488_s17 = sphi %s9580_s17, %s10765_s17  }
   0xc   : > { %s8254_s22 = sadd.s32 4294967294, %s9500_s20   ;;  %p104_p0 = scmp.ne.s32.totalorder %s9492_s18, %s9488_s17 }
   0xd   : > { %p10735_p1 = scmp.eq.s32.totalorder %s9601_s21, 0  ;;  %p281_p3 = scmp.eq.s32.totalorder %s8254_s22, 1 }
   0xe   : > { %p8255_p5 = scmp.ge.s32.totalorder %s9500_s20, 1  ;;  %p314_p7 = scmp.lt.s32.totalorder %s9500_s20, 3 }
   0xf   : > { %p9610_p4 = por %p10735_p1, %p104_p0  ;;  %p9615_p6 = por %p281_p3, %p104_p0 }
  0x10   : > { %p9620_p8 = pnand %p8255_p5, %p314_p7  ;;  %s9502_s26 = smov [#allocation5]  }
  0x11   : > { %s10742_s23 = scalar_select %p9610_p4, 1, 0 }
  0x12   : > { %s10743_s24 = scalar_select %p9615_p6, 1, 0 }
  0x13   : > { %s10745_s25 = scalar_select %p9620_p8, 1, 0 }
  0x14   : > { %10744 = sst [smem:[#allocation15_spill]] %s10743_s24  ;;  %s335_s27 = sshll.u32 %s9502_s26, 4  ;;  %s336_s27 = int_to_ptr.vmem [resolvable:$true] %s335_s27 }
  0x15   : > { %p9255_p9 = pneg %p9620_p8  ;;  %s9634_s29 = sadd.s32 1, %s9500_s20  }
  0x16   : > { %10747 = sst [smem:[#allocation16_spill]] %s9634_s29  ;;  %s91_s30 = sadd.s32 1, %s9496_s19 }
  0x17   : > { %p9629_p11 = pnand %p9255_p9, %p10735_p1  ;;  %s88_s12 = ssub.s32 %s9500_s20, %s9634_s29 }
  0x18   : > { %s9359_s13 = scalar_lea.vmem %s336_s27, 512  ;;  %p9367_p5 = scmp.lt.s32.totalorder %s336_s27, %s336_s27 }
  0x19   : > { %p9350_p12 = pneg %p9629_p11  ;;  %p9360_p13 = scmp.ne.s32.totalorder %s336_s27, %s9359_s13 }
  0x1a   : > { %p9368_p7 = scmp.lt.s32.totalorder %s9359_s13, %s9359_s13 }
  0x1b   : > { %p9362_p0 = pnand %p9360_p13, %p9350_p12 }
  0x1c   : > { %p9369_p10 = por %p9368_p7, %p9367_p5 }
  0x1d   : > { %p9363_p3 = pneg %p9362_p0 }
  0x1f   : > { %p9370_p2 = pnand %p9369_p10, %p9363_p3 }
  0x21   : > { %9373 = shalt.err (!%p9370_p2)
}
  0x22   : > { %s9503_s14 = smov 128   ;;  %s9504_s15 = smov 8  }
  0x23   : > { %s10748_s6 = sld [smem:[#allocation18_spill]]  ;;  %p89_p9 = scmp.eq.s32.totalorder %s88_s12, 0 }
  0x24   : > { %p98_p12 = scmp.ne.s32.totalorder %s9496_s19, %s9492_s18  ;;  %p99_p10 = scmp.eq.s32.totalorder %s9500_s20, 0 }
  0x25   : > { %p9271_p2 = scmp.lt.s32.totalorder %s9500_s20, 2  ;;  %p10750_p0 = scmp.eq.s32.totalorder %s9601_s21, 1 }
  0x26   : > { %s9651_s26 = scalar_select %p89_p9, %s9496_s19, %s91_s30  }
  0x27   : > { %p100_p13 = por %p99_p10, %p98_p12  ;;  %p9655_p3 = por %p10750_p0, %p98_p12 }
  0x28   : > { %10749 = sst [smem:[#allocation17_spill]] %s9651_s26  ;;  %s372_s29 = sand.u32 1, %s9496_s19  }
  0x29   : > { %9258 = dma.hbm_to_vmem [thread:$0]  (!%p9629_p11), %s10748_s6, 512, %s336_s27, [#allocation6], %s9503_s14, %s9503_s14, %s9504_s15  }
  0x2a   : > { %s10751_s13 = scalar_select %p9655_p3, 1, 0 }
  0x2b   : > { %s8259_s24 = sshll.u32 %s9500_s20, 5  ;;  %s8258_s17 = sshll.u32 %s372_s29, 1 }
  0x2c   : > { %s9664_s16 = scalar_lea.hbm %s10720_s2, %s8259_s24  ;;  %s376_s27 = scalar_lea.vmem [#allocation2], %s8258_s17 }
  0x2d   : > { %s383_s30 = sshll.u32 %s376_s27, 4  ;;  %p9666_p11 = pnand %p9271_p2, %p100_p13  ;;  %s384_s30 = int_to_ptr.vmem [resolvable:$true] %s383_s30 }
  0x2e   : > { %s373_s14 = scalar_lea.sflag [#allocation3], %s372_s29  ;;  %s9374_s15 = scalar_lea.hbm %s9664_s16, 32 }
  0x2f   : > { %p9375_p5 = scmp.ne.s32.totalorder %s9664_s16, %s9374_s15  ;;  %p9376_p7 = pneg %p9666_p11 }
  0x30   : > { %s9379_s22 = scalar_lea.hbm %s10720_s2, 64  ;;  %p9380_p10 = scmp.lt.s32.totalorder %s9664_s16, %s10720_s2 }
  0x31   : > { %p9377_p9 = pnand %p9376_p7, %p9375_p5  ;;  %p9381_p2 = scmp.lt.s32.totalorder %s9379_s22, %s9374_s15 }
  0x33   : > { %p9378_p12 = pneg %p9377_p9  ;;  %p9382_p13 = por %p9381_p2, %p9380_p10 }
  0x35   : > { %p9383_p0 = pnand %p9382_p13, %p9378_p12 }
  0x37   : > { %9386 = shalt.err (!%p9383_p0)
}
  0x38   : > { %s9387_s27 = scalar_lea.vmem %s384_s30, 32  ;;  %s9505_s29 = smov [#allocation2]  }
  0x39   : > { %p9388_p1 = scmp.ne.s32.totalorder %s384_s30, %s9387_s27  ;;  %s9392_s6 = sshll.u32 %s9505_s29, 4  ;;  %s9393_s6 = int_to_ptr.vmem [resolvable:$false] %s9392_s6 }
  0x3a   : > { %s9394_s26 = scalar_lea.vmem %s9393_s6, 64  ;;  %p9395_p5 = scmp.lt.s32.totalorder %s384_s30, %s9393_s6 }
  0x3b   : > { %p9390_p6 = pnand %p9388_p1, %p9376_p7  ;;  %p9396_p9 = scmp.lt.s32.totalorder %s9394_s26, %s9387_s27 }
  0x3d   : > { %p9391_p3 = pneg %p9390_p6  ;;  %p9397_p4 = por %p9396_p9, %p9395_p5 }
  0x3f   : > { %p9398_p8 = pnand %p9397_p4, %p9391_p3 }
  0x41   : > { %9401 = shalt.err (!%p9398_p8)
}
  0x42   : > { %9262 = dma.hbm_to_vmem [thread:$0]  (!%p9666_p11), %s9664_s16, 32, %s384_s30, %s373_s14  }
  0x43   : > { %p10753_p12 = scmp.ne.s32.totalorder %s10745_s25, 0 }
  0x44   : > { %s9687_s15 = sand.u32 (!%p10753_p12), 1, %s9492_s18   ;;  %p10754_p1 = scmp.ne.s32.totalorder (!%p10753_p12), %s10742_s23, 0 }
  0x45   : > { %392 = sbr.rel (%p10753_p12) target bundleno = 4534 (0x11b6), region = 60  ;;  %s8261_s10 = sshll.u32 (!%p10753_p12), %s9687_s15, 1 }
  0x46   : > { %s395_s24 = scalar_lea.sflag (!%p10753_p12), [#allocation3], %s9687_s15  ;;  %s9691_s6 = scalar_lea.vmem (!%p10753_p12), [#allocation2], %s8261_s10 }
  0x4a   : > { %9471 = dma.done.wait (%p10754_p1), %s395_s24, 32  }
  0x4b   : > { %9473 = vsyncadd (%p10754_p1), %s395_s24, 4294967264  ;;  %p10755_p4 = scmp.eq.s32.totalorder %s9601_s21, 0 }
  0x4d   : > { %9475 = dma.done.wait (%p10755_p4), [#allocation6], 512   ;;  %p10756_p6 = pmov %p10755_p4 }
  0x4e   : > { %p454_p8 = scmp.lt.s32.totalorder %s9601_s21, 1  ;;  %vm470_vm0 = vcmask 261120   ;;  %v498_v7 = vld [vmem:[%s10721_s3 + $0x18] sm:$0xff]  ;;  %v497_v8 = vld [vmem:[%s10721_s3 + $0x10] sm:$0xff]  ;;  %v496_v9 = vld [vmem:[%s10721_s3 + $0x8] sm:$0xff]  ;;  %v9506_v10 = vmov 0.0  }
  0x4f   : > { %9477 = vsyncadd (%p10756_p6), [#allocation6], 4294966784  ;;  %8584 = vmatprep.subr.mxu1 %v9506_v10  ;;  %v9730_v11 = vand.u32 4294901760, %v498_v7  ;;  %v9732_v12 = vand.u32 4294901760, %v497_v8  ;;  %v9734_v13 = vand.u32 4294901760, %v496_v9  ;;  %v495_v14 = vld [vmem:[%s10721_s3] sm:$0xff]  ;;  %8573 = vmatprep.subr.mxu0 %v9506_v10 }
  0x50   : > { %s9703_s25 = scalar_select %p454_p8, %s9601_s21, 1  ;;  %v9740_v15 = vand.u32 4294901760, %v495_v14  ;;  %vm9507_vm1 = vmmov 0   ;;  %v8267_v36 = vld [vmem:[%s10727_s9] ss:$0 sm:$0xff]  ;;  %v990_v43 = vld [vmem:[%s10722_s4 + $0x18] sm:$0xff] }
  0x51   : > { %8592 = vmatprep.mubr.msk.f32.mxu1 %vm9507_vm1, %v9506_v10  ;;  %8581 = vmatprep.mubr.msk.f32.mxu0 %vm9507_vm1, %v9506_v10  ;;  %v9747_v16 = vsub.f32 %v498_v7, %v9730_v11  ;;  %v9750_v17 = vsub.f32 %v497_v8, %v9732_v12  ;;  %v9753_v18 = vsub.f32 %v496_v9, %v9734_v13  ;;  %v8268_v38 = vld [vmem:[%s10727_s9 + $0x1] ss:$0 sm:$0xff]  ;;  %v989_v45 = vld [vmem:[%s10722_s4 + $0x10] sm:$0xff]  ;;  %v9806_v46 = vand.u32 4294901760, %v990_v43  ;;  %v988_v48 = vld [vmem:[%s10722_s4 + $0x8] sm:$0xff]  ;;  %s9508_s16 = smov 96  }
  0x52   : > { %s8265_s26 = sshll.u32 %s9703_s25, 3  ;;  %8574 = vmatpush3.msra.mxu0 %v9730_v11  ;;  %v9757_v19 = vsub.f32 %v495_v14, %v9740_v15  ;;  %v9813_v49 = vand.u32 4294901760, %v989_v45  ;;  %v9820_v52 = vand.u32 4294901760, %v988_v48  ;;  %v987_v54 = vld [vmem:[%s10722_s4] sm:$0xff]  ;;  %vm1488_vm2 = vcmask 64512   ;;  %s8264_s30 = sshll.u32 %s9687_s15, 5 }
  0x53   : > { %s9711_s23 = scalar_lea.vmem %s10718_s0, %s8265_s26  ;;  %8575 = vmatprep.subr.mxu0 %v9506_v10  ;;  %v608_v20 = vand.u32 4294901760, %v9747_v16  ;;  %v615_v21 = vand.u32 4294901760, %v9750_v17  ;;  %v622_v22 = vand.u32 4294901760, %v9753_v18  ;;  %v9818_v51 = vsub.f32 %v990_v43, %v9806_v46  ;;  %s10014_s12 = scalar_lea.vmem [#allocation8], %s8264_s30 }
  0x54   : > { %v9714_v0 = vld [vmem:[%s9711_s23] sm:$0xff]  ;;  %8576 = vmatpush3.msra.mxu0 %v9732_v12  ;;  %v629_v23 = vand.u32 4294901760, %v9757_v19  ;;  %v9828_v55 = vsub.f32 %v989_v45, %v9813_v49  ;;  %v9834_v57 = vsub.f32 %v988_v48, %v9820_v52  ;;  %v9836_v58 = vand.u32 4294901760, %v987_v54  ;;  %s9510_s14 = smov 112   ;;  %s9511_s22 = smov 88  }
  0x55   : > { %v471_v1 = vsel %vm470_vm0, %v9714_v0, 0.0  ;;  %8577 = vmatprep.subr.mxu0 %v9506_v10  ;;  %v609_v24 = vsub.f32 %v9747_v16, %v608_v20  ;;  %v616_v25 = vsub.f32 %v9750_v17, %v615_v21  ;;  %v623_v26 = vsub.f32 %v9753_v18, %v622_v22  ;;  %s9512_s10 = smov 80   ;;  %s9513_s24 = smov 104  }
  0x56   : > { %472 = vadd.xlane.f32.xlu0 %v471_v1  ;;  %8578 = vmatpush3.msra.mxu0 %v9734_v13  ;;  %v630_v29 = vsub.f32 %v9757_v19, %v629_v23  ;;  %v1100_v56 = vand.u32 4294901760, %v9818_v51  ;;  %v992_v59 = vsel %vm470_vm0, %v9714_v0, 0  ;;  %v1107_v60 = vand.u32 4294901760, %v9828_v55  ;;  %s9514_s30 = smov 72   ;;  %s461_s27 = scalar_lea.vmem %s10719_s1, %s8265_s26 }
  0x57   : > { %8579 = vmatprep.subr.mxu0 %v9506_v10  ;;  %v610_v27 = vand.u32 4294901760, %v609_v24  ;;  %v617_v28 = vand.u32 4294901760, %v616_v25  ;;  %v624_v30 = vand.u32 4294901760, %v623_v26  ;;  %v1114_v62 = vand.u32 4294901760, %v9834_v57  ;;  %s8263_s29 = sshll.u32 %s9687_s15, 3  ;;  %s8115_s25 = sshll.u32 %s10014_s12, 4  ;;  %s10650_s25 = int_to_ptr.vmem [resolvable:$true] %s8115_s25 }
  0x58   : > { %8580 = vmatpush3.msra.mxu0 %v9740_v15  ;;  %v631_v31 = vand.u32 4294901760, %v630_v29  ;;  %v1101_v61 = vsub.f32 %v9818_v51, %v1100_v56  ;;  %v9854_v63 = vsub.f32 %v987_v54, %v9836_v58  ;;  %v1108_v1 = vsub.f32 %v9828_v55, %v1107_v60  ;;  %p10757_p11 = scmp.ne.s32.totalorder %s10751_s13, 0 }
  0x59   : > { %8595 = vmatprep.subr.mxu0 %v9506_v10  ;;  %8585 = vmatpush3.msra.mxu1 %v610_v27  ;;  %vm7539_vm5 = vcmask 523264  }
  0x5a   : > { %8586 = vmatprep.subr.mxu1 %v9506_v10 }
  0x5b   : > { %8587 = vmatpush3.msra.mxu1 %v617_v28 }
  0x5c   : > { %8588 = vmatprep.subr.mxu1 %v9506_v10 }
  0x5d   : > { %8589 = vmatpush3.msra.mxu1 %v624_v30 }
  0x5e   : > { %8590 = vmatprep.subr.mxu1 %v9506_v10 }
  0x5f   : > { %8591 = vmatpush3.msra.mxu1 %v631_v31 }
  0x60   : > { %8606 = vmatprep.subr.mxu1 %v9506_v10 }
  0xdf   : > { %v473_v2 = vpop.xlane.xlu0 %472 }
  0xe0   : > { %v475_v3 = vmul.f32 0.03125, %v473_v2  ;;  %v1102_v2 = vand.u32 4294901760, %v1101_v61 }
  0xe2   : > { %v476_v4 = vsub.f32 %v9714_v0, %v475_v3  ;;  %v9856_v0 = vand.u32 4294901760, %v992_v59  ;;  %v1115_v3 = vsub.f32 %v9834_v57, %v1114_v62 }
  0xe4   : > { %v477_v5 = vmul.f32 %v476_v4, %v476_v4  ;;  %v1116_v7 = vand.u32 4294901760, %v1115_v3 }
  0xe6   : > { %v478_v6 = vsel %vm470_vm0, %v477_v5, 0.0  ;;  %v1064_v5 = vsub.f32 %v992_v59, %v9856_v0 }
  0xe7   : > { %479 = vadd.xlane.f32.xlu0 %v478_v6  ;;  %v1109_v6 = vand.u32 4294901760, %v1108_v1 }
  0xe8   : > { %v1065_v9 = vand.u32 4294901760, %v1064_v5 }
 0x170   : > { %v480_v32 = vpop.xlane.xlu0 %479 }
 0x171   : > { %v481_v33 = vmul.f32 0.03125, %v480_v32 }
 0x173   : > { %v482_v34 = vadd.f32 1e-06, %v481_v33 }
 0x175   : > { %9323 = vrsqrt.f32 %v482_v34 }
 0x182   : > { %v9324_v35 = vpop.eup %9323 }
 0x183   : > { %v484_v37 = vmul.f32 %v9324_v35, %v476_v4  ;;  %v1121_v4 = vand.u32 4294901760, %v9854_v63 }
 0x185   : > { %v489_v39 = vmul.f32 %v8267_v36, %v484_v37  ;;  %v1122_v8 = vsub.f32 %v9854_v63, %v1121_v4 }
 0x187   : > { %v494_v40 = vadd.f32 %v8268_v38, %v489_v39 }
 0x189   : > { %v500_v41 = vsel %vm470_vm0, %v494_v40, 0 }
 0x18a   : > { %v9793_v42 = vand.u32 4294901760, %v500_v41 }
 0x18c   : > { %v572_v44 = vsub.f32 %v500_v41, %v9793_v42  ;;  %8593 = vmatmul.mubr.f32.vlgmr.msra.gmra.mxu1 %v9793_v42 }
 0x18d   : > { %8607 = vmatpush3.msra.mxu1 %v9730_v11  ;;  %8614 = vmatprep.mubr.msk.f32.mxu1 %vm9507_vm1, %v9506_v10 }
 0x18e   : > { %8608 = vmatprep.subr.mxu1 %v9506_v10  ;;  %v573_v47 = vand.u32 4294901760, %v572_v44 }
 0x18f   : > { %8609 = vmatpush3.msra.mxu1 %v9732_v12 }
 0x190   : > { %8610 = vmatprep.subr.mxu1 %v9506_v10  ;;  %v574_v50 = vsub.f32 %v572_v44, %v573_v47 }
 0x191   : > { %8611 = vmatpush3.msra.mxu1 %v9734_v13 }
 0x192   : > { %8612 = vmatprep.subr.mxu1 %v9506_v10  ;;  %v575_v53 = vand.u32 4294901760, %v574_v50 }
 0x193   : > { %8613 = vmatpush3.msra.mxu1 %v9740_v15 }
 0x194   : > { %8615 = vmatmul.mubr.f32.vlgmr.msra.gmra.mxu1 %v573_v47  ;;  %8628 = vmatprep.subr.mxu1 %v9506_v10 }
 0x195   : > { %8582 = vmatmul.mubr.f32.vlgmr.msra.gmra.mxu0 %v575_v53  ;;  %8629 = vmatpush3.msra.mxu1 %v9730_v11  ;;  %v1123_v11 = vand.u32 4294901760, %v1122_v8 }
 0x196   : > { %8596 = vmatpush3.msra.mxu0 %v9747_v16  ;;  %8630 = vmatprep.subr.mxu1 %v9506_v10 }
 0x197   : > { %8597 = vmatprep.subr.mxu0 %v9506_v10  ;;  %8631 = vmatpush3.msra.mxu1 %v9732_v12  ;;  %v1066_v12 = vsub.f32 %v1064_v5, %v1065_v9 }
 0x198   : > { %8598 = vmatpush3.msra.mxu0 %v9750_v17  ;;  %8632 = vmatprep.subr.mxu1 %v9506_v10 }
 0x199   : > { %8599 = vmatprep.subr.mxu0 %v9506_v10  ;;  %8633 = vmatpush3.msra.mxu1 %v9734_v13  ;;  %v1067_v13 = vand.u32 4294901760, %v1066_v12 }
 0x19a   : > { %8600 = vmatpush3.msra.mxu0 %v9753_v18  ;;  %8634 = vmatprep.subr.mxu1 %v9506_v10 }
 0x19b   : > { %8601 = vmatprep.subr.mxu0 %v9506_v10  ;;  %8603 = vmatprep.mubr.msk.f32.mxu0 %vm9507_vm1, %v9506_v10 }
 0x19c   : > { %8602 = vmatpush3.msra.mxu0 %v9757_v19  ;;  %8635 = vmatpush3.msra.mxu1 %v9740_v15 }
 0x19d   : > { %8636 = vmatprep.mubr.msk.f32.mxu1 %vm9507_vm1, %v9506_v10  ;;  %8604 = vmatmul.mubr.f32.vlgmr.msra.gmra.mxu0 %v572_v44 }
 0x19e   : > { %8617 = vmatprep.subr.mxu0 %v9506_v10  ;;  %8637 = vmatmul.mubr.f32.vlgmr.msra.gmra.mxu1 %v9793_v42 }
 0x19f   : > { %8618 = vmatpush3.msra.mxu0 %v608_v20  ;;  %8625 = vmatprep.mubr.msk.f32.mxu0 %vm9507_vm1, %v9506_v10 }
 0x1a0   : > { %8619 = vmatprep.subr.mxu0 %v9506_v10  ;;  %8650 = vmatprep.subr.mxu1 %v9506_v10 }
 0x1a1   : > { %8620 = vmatpush3.msra.mxu0 %v615_v21  ;;  %8651 = vmatpush3.msra.mxu1 %v1102_v2 }
 0x1a2   : > { %8621 = vmatprep.subr.mxu0 %v9506_v10  ;;  %8652 = vmatprep.subr.mxu1 %v9506_v10 }
 0x1a3   : > { %8622 = vmatpush3.msra.mxu0 %v622_v22  ;;  %8653 = vmatpush3.msra.mxu1 %v1109_v6  ;;  %v1484_v6 = vld [vmem:[%s9691_s6] sm:$0x3]  ;;  %s9509_s6 = smov 120  }
 0x1a4   : > { %8623 = vmatprep.subr.mxu0 %v9506_v10  ;;  %8654 = vmatprep.subr.mxu1 %v9506_v10 }
 0x1a5   : > { %8624 = vmatpush3.msra.mxu0 %v629_v23  ;;  %8655 = vmatpush3.msra.mxu1 %v1116_v7 }
 0x1a6   : > { %8626 = vmatmul.mubr.f32.vlgmr.msra.gmra.mxu0 %v9793_v42  ;;  %8639 = vmatprep.subr.mxu0 %v9506_v10 }
 0x1a7   : > { %8640 = vmatpush3.msra.mxu0 %v9806_v46  ;;  %8656 = vmatprep.subr.mxu1 %v9506_v10 }
 0x1a8   : > { %8641 = vmatprep.subr.mxu0 %v9506_v10  ;;  %8647 = vmatprep.mubr.msk.f32.mxu0 %vm9507_vm1, %v9506_v10 }
 0x1a9   : > { %8642 = vmatpush3.msra.mxu0 %v9813_v49  ;;  %8657 = vmatpush3.msra.mxu1 %v1123_v11  ;;  %v1485_v11 = vunpack.c.0.s8 %v1484_v6 }
 0x1aa   : > { %8643 = vmatprep.subr.mxu0 %v9506_v10  ;;  %8658 = vmatprep.mubr.msk.f32.mxu1 %vm9507_vm1, %v9506_v10 }
 0x1ab   : > { %8644 = vmatpush3.msra.mxu0 %v9820_v52  ;;  %8672 = vmatprep.subr.mxu1 %v9506_v10 }
 0x1ac   : > { %8645 = vmatprep.subr.mxu0 %v9506_v10  ;;  %8659 = vmatmul.mubr.f32.vlgmr.msra.gmra.mxu1 %v9856_v0 }
 0x1ad   : > { %8646 = vmatpush3.msra.mxu0 %v9836_v58  ;;  %8673 = vmatpush3.msra.mxu1 %v9806_v46 }
 0x1ae   : > { %8648 = vmatmul.mubr.f32.vlgmr.msra.gmra.mxu0 %v1067_v13  ;;  %8661 = vmatprep.subr.mxu0 %v9506_v10 }
 0x1af   : > { %8662 = vmatpush3.msra.mxu0 %v9818_v51  ;;  %8674 = vmatprep.subr.mxu1 %v9506_v10 }
 0x1b0   : > { %8663 = vmatprep.subr.mxu0 %v9506_v10  ;;  %8675 = vmatpush3.msra.mxu1 %v9813_v49 }
 0x1b1   : > { %8664 = vmatpush3.msra.mxu0 %v9828_v55  ;;  %8676 = vmatprep.subr.mxu1 %v9506_v10 }
 0x1b2   : > { %8665 = vmatprep.subr.mxu0 %v9506_v10  ;;  %8677 = vmatpush3.msra.mxu1 %v9820_v52 }
 0x1b3   : > { %8666 = vmatpush3.msra.mxu0 %v9834_v57  ;;  %8678 = vmatprep.subr.mxu1 %v9506_v10 }
 0x1b4   : > { %8667 = vmatprep.subr.mxu0 %v9506_v10  ;;  %8669 = vmatprep.mubr.msk.f32.mxu0 %vm9507_vm1, %v9506_v10 }
 0x1b5   : > { %8668 = vmatpush3.msra.mxu0 %v9854_v63  ;;  %8679 = vmatpush3.msra.mxu1 %v9836_v58 }
 0x1b6   : > { %8670 = vmatmul.mubr.f32.vlgmr.msra.gmra.mxu0 %v1064_v5  ;;  %8680 = vmatprep.mubr.msk.f32.mxu1 %vm9507_vm1, %v9506_v10 }
 0x1b7   : > { %8683 = vmatprep.subr.mxu0 %v9506_v10  ;;  %8694 = vmatprep.subr.mxu1 %v9506_v10 }
 0x1b8   : > { %8681 = vmatmul.mubr.f32.vlgmr.msra.gmra.mxu1 %v1065_v9  ;;  %8684 = vmatpush3.msra.mxu0 %v1100_v56 }
 0x1b9   : > { %8695 = vmatpush3.msra.mxu1 %v9806_v46  ;;  %8685 = vmatprep.subr.mxu0 %v9506_v10 }
 0x1ba   : > { %8696 = vmatprep.subr.mxu1 %v9506_v10  ;;  %8686 = vmatpush3.msra.mxu0 %v1107_v60 }
 0x1bb   : > { %8697 = vmatpush3.msra.mxu1 %v9813_v49  ;;  %8687 = vmatprep.subr.mxu0 %v9506_v10 }
 0x1bc   : > { %8698 = vmatprep.subr.mxu1 %v9506_v10  ;;  %8688 = vmatpush3.msra.mxu0 %v1114_v62 }
 0x1bd   : > { %8699 = vmatpush3.msra.mxu1 %v9820_v52  ;;  %8689 = vmatprep.subr.mxu0 %v9506_v10 }
 0x1be   : > { %8700 = vmatprep.subr.mxu1 %v9506_v10  ;;  %8690 = vmatpush3.msra.mxu0 %v1121_v4 }
 0x1bf   : > { %8691 = vmatprep.mubr.msk.f32.mxu0 %vm9507_vm1, %v9506_v10  ;;  %8701 = vmatpush3.msra.mxu1 %v9836_v58 }
 0x1c0   : > { %8702 = vmatprep.mubr.msk.f32.mxu1 %vm9507_vm1, %v9506_v10  ;;  %8692 = vmatmul.mubr.f32.vlgmr.msra.gmra.mxu0 %v9856_v0 }
 0x1c1   : > { %8703 = vmatmul.mubr.f32.vlgmr.msra.gmra.mxu1 %v9856_v0  ;;  %8705 = vmatprep.subr.mxu0 %v9506_v10 }
 0x1c2   : > { %8707 = vmatprep.mubr.msk.f32.mxu0 %vm9507_vm1, %v9506_v10  ;;  %8710 = vmatprep.subr.mxu1 %v9506_v10 }
 0x1c3   : > { %8712 = vmatprep.mubr.msk.f32.mxu1 %vm9507_vm1, %v9506_v10 }
 0x24c   : > { %v668_v14 = vpop.f32.mrf.mxu1 }
 0x24e   : > { %v8594_v15 = vpop.f32.mrf.mxu1 }
 0x254   : > { %v825_v16 = vpop.f32.mrf.mxu1 }
 0x255   : > { %v577_v17 = vpop.f32.mrf.mxu0 }
 0x256   : > { %v8616_v18 = vpop.f32.mrf.mxu1  ;;  %v669_v24 = vadd.f32 %v668_v14, %v577_v17  ;;  %v10003_v17 = vcvt.s32.f32 %v1485_v11 }
 0x257   : > { %v8583_v19 = vpop.f32.mrf.mxu0 }
 0x258   : > { %vm1487_vm3 = vcmp.gt.f32.partialorder %v10003_v17, 0.0 }
 0x25d   : > { %v748_v20 = vpop.f32.mrf.mxu0 }
 0x25e   : > { %v983_v21 = vpop.f32.mrf.mxu1  ;;  %v749_v25 = vadd.f32 %v748_v20, %v669_v24 }
 0x25f   : > { %v8605_v22 = vpop.f32.mrf.mxu0 }
 0x260   : > { %v8638_v23 = vpop.f32.mrf.mxu1  ;;  %v826_v27 = vadd.f32 %v825_v16, %v749_v25 }
 0x266   : > { %v908_v26 = vpop.f32.mrf.mxu0 }
 0x267   : > { %v909_v29 = vadd.f32 %v908_v26, %v826_v27 }
 0x268   : > { %v8627_v28 = vpop.f32.mrf.mxu0 }
 0x269   : > { %v984_v31 = vadd.f32 %v983_v21, %v909_v29 }
 0x26b   : > { %v9963_v35 = vmul.f32 0.35355338, %v984_v31 }
 0x26c   : > { %v1160_v30 = vpop.f32.mrf.mxu1 }
 0x26d   : > { %v1490_v36 = vsel %vm1488_vm2, %v9963_v35, 0 }
 0x26e   : > { %v1069_v32 = vpop.f32.mrf.mxu0  ;;  %v8660_v33 = vpop.f32.mrf.mxu1  ;;  %v1561_v40 = vand.u32 4294901760, %v1490_v36 }
 0x26f   : > { %v1161_v41 = vadd.f32 %v1160_v30, %v1069_v32 }
 0x270   : > { %v8649_v34 = vpop.f32.mrf.mxu0  ;;  %v1562_v44 = vsub.f32 %v1490_v36, %v1561_v40 }
 0x272   : > { %v1563_v49 = vand.u32 4294901760, %v1562_v44 }
 0x274   : > { %v1564_v54 = vsub.f32 %v1562_v44, %v1563_v49 }
 0x276   : > { %v1240_v37 = vpop.f32.mrf.mxu0  ;;  %v1565_v57 = vand.u32 4294901760, %v1564_v54 }
 0x277   : > { %v1241_v43 = vadd.f32 %v1240_v37, %v1161_v41 }
 0x278   : > { %v1317_v38 = vpop.f32.mrf.mxu1  ;;  %v8671_v39 = vpop.f32.mrf.mxu0 }
 0x279   : > { %v1318_v45 = vadd.f32 %v1317_v38, %v1241_v43 }
 0x27a   : > { %v8682_v42 = vpop.f32.mrf.mxu1 }
 0x280   : > { %v1400_v46 = vpop.f32.mrf.mxu0 }
 0x281   : > { %v1401_v47 = vadd.f32 %v1400_v46, %v1318_v45  ;;  %v1475_v48 = vpop.f32.mrf.mxu1 }
 0x282   : > { %v8693_v50 = vpop.f32.mrf.mxu0 }
 0x283   : > { %v9967_v51 = vadd.f32 %v1475_v48, %v1401_v47  ;;  %v8704_v52 = vpop.f32.mrf.mxu1 }
 0x285   : > { %1954 = vrot.lane.b32.xlu0 %v9967_v51, %s9508_s16  ;;  %v1493_v53 = vsel %vm1488_vm2, %v9967_v51, 0  ;;  %s9402_s16 = scalar_lea.vmem %s10650_s25, 512 }
 0x286   : > { %v1526_v55 = vand.u32 4294901760, %v1493_v53  ;;  %p9403_p3 = scmp.ne.s32.totalorder %s10650_s25, %s9402_s16 }
 0x288   : > { %8706 = vmatpush3.xpose.msra.mxu0 %v1526_v55  ;;  %v1603_v56 = vsub.f32 %v1493_v53, %v1526_v55  ;;  %p9404_p7 = pnand %p9403_p3, %p10757_p11 }
 0x289   : > { %8715 = vmatprep.subr.mxu0 %v9506_v10 }
 0x28a   : > { %v1604_v58 = vand.u32 4294901760, %v1603_v56  ;;  %p9405_p10 = pneg %p9404_p7 }
 0x28b   : > { %8708 = vmatmul.mubr.f32.vlgmr.msra.gmra.mxu0 %v1565_v57 }
 0x28c   : > { %8716 = vmatpush3.xpose.msra.mxu0 %v1603_v56  ;;  %8717 = vmatprep.mubr.msk.f32.mxu0 %vm9507_vm1, %v9506_v10  ;;  %v1605_v59 = vsub.f32 %v1603_v56, %v1604_v58 }
 0x28d   : > { %8725 = vmatprep.subr.mxu0 %v9506_v10 }
 0x28e   : > { %v1606_v60 = vand.u32 4294901760, %v1605_v59 }
 0x28f   : > { %8718 = vmatmul.mubr.f32.vlgmr.msra.gmra.mxu0 %v1562_v44 }
 0x290   : > { %8711 = vmatpush3.xpose.msra.mxu1 %v1606_v60  ;;  %8726 = vmatpush3.xpose.msra.mxu0 %v1604_v58 }
 0x291   : > { %8727 = vmatprep.mubr.msk.f32.mxu0 %vm9507_vm1, %v9506_v10  ;;  %8720 = vmatprep.subr.mxu1 %v9506_v10 }
 0x292   : > { %8735 = vmatprep.subr.mxu0 %v9506_v10 }
 0x293   : > { %8713 = vmatmul.mubr.f32.vlgmr.msra.gmra.mxu1 %v1561_v40  ;;  %8728 = vmatmul.mubr.f32.vlgmr.msra.gmra.mxu0 %v1561_v40 }
 0x294   : > { %8721 = vmatpush3.xpose.msra.mxu1 %v1526_v55  ;;  %8722 = vmatprep.mubr.msk.f32.mxu1 %vm9507_vm1, %v9506_v10 }
 0x295   : > { %8730 = vmatprep.subr.mxu1 %v9506_v10  ;;  %8737 = vmatprep.mubr.msk.f32.mxu0 %vm9507_vm1, %v9506_v10 }
 0x297   : > { %8723 = vmatmul.mubr.f32.vlgmr.msra.gmra.mxu1 %v1563_v49 }
 0x298   : > { %8731 = vmatpush3.xpose.msra.mxu1 %v1526_v55  ;;  %8732 = vmatprep.mubr.msk.f32.mxu1 %vm9507_vm1, %v9506_v10 }
 0x299   : > { %8740 = vmatprep.subr.mxu1 %v9506_v10 }
 0x29b   : > { %8733 = vmatmul.mubr.f32.vlgmr.msra.gmra.mxu1 %v1561_v40 }
 0x29c   : > { %8742 = vmatprep.mubr.msk.f32.mxu1 %vm9507_vm1, %v9506_v10 }
 0x2f7   : > { %v1955_v61 = vpop.permute.xlu0 %1954 }
 0x2f8   : > { %v9990_v62 = vand.u32 4294901760, %v1955_v61 }
 0x2fa   : > { %v9993_v63 = vsub.f32 %v1955_v61, %v9990_v62  ;;  %8736 = vmatpush3.msra.mxu0 %v9990_v62 }
 0x2fb   : > { %8745 = vmatprep.subr.mxu0 %v9506_v10 }
 0x2fc   : > { %v2069_v0 = vand.u32 4294901760, %v9993_v63 }
 0x2fe   : > { %v2070_v1 = vsub.f32 %v9993_v63, %v2069_v0 }
 0x300   : > { %v2071_v2 = vand.u32 4294901760, %v2070_v1 }
 0x302   : > { %8741 = vmatpush3.msra.mxu1 %v2071_v2 }
 0x303   : > { %8750 = vmatprep.subr.mxu1 %v9506_v10 }
 0x34b   : > { %v1567_v3 = vpop.f32.mrf.mxu0 }
 0x34d   : > { %v8709_v4 = vpop.f32.mrf.mxu0 }
 0x34f   : > { %v1717_v5 = vpop.f32.mrf.mxu0 }
 0x351   : > { %v8719_v7 = vpop.f32.mrf.mxu0 }
 0x353   : > { %v1643_v8 = vpop.f32.mrf.mxu1  ;;  %v1865_v9 = vpop.f32.mrf.mxu0 }
 0x354   : > { %v1644_v12 = vadd.f32 %v1643_v8, %v1567_v3 }
 0x355   : > { %v8714_v13 = vpop.f32.mrf.mxu1  ;;  %v8729_v14 = vpop.f32.mrf.mxu0 }
 0x356   : > { %v1718_v15 = vadd.f32 %v1717_v5, %v1644_v12 }
 0x357   : > { %v1791_v16 = vpop.f32.mrf.mxu1 }
 0x358   : > { %v1792_v18 = vadd.f32 %v1791_v16, %v1718_v15 }
 0x359   : > { %v8724_v19 = vpop.f32.mrf.mxu1 }
 0x35a   : > { %v1866_v20 = vadd.f32 %v1865_v9, %v1792_v18 }
 0x35b   : > { %v1937_v21 = vpop.f32.mrf.mxu1 }
 0x35c   : > { %v1938_v22 = vadd.f32 %v1937_v21, %v1866_v20 }
 0x35d   : > { %v8734_v23 = vpop.f32.mrf.mxu1 }
 0x35e   : > { %v1941_v24 = vsel %vm1487_vm3, -1e+09, %v1938_v22 }
 0x35f   : > { %v1942_v25 = vsel %vm1488_vm2, %v1941_v24, -inf }
 0x360   : > { %1943 = vmax.xlane.f32.xlu1 %v1942_v25 }
 0x3e9   : > { %v1944_v26 = vpop.xlane.xlu1 %1943 }
 0x3ea   : > { %v1945_v27 = vsub.f32 %v1941_v24, %v1944_v26 }
 0x3ec   : > { %v1946_v28 = vmul.f32 1.442695, %v1945_v27 }
 0x3ee   : > { %9325 = vpow2.f32 %v1946_v28 }
 0x3fb   : > { %v9326_v29 = vpop.eup %9325 }
 0x3fc   : > { %v1948_v30 = vsel %vm1488_vm2, %v9326_v29, 0.0 }
 0x3fd   : > { %1949 = vadd.xlane.f32.xlu1 %v1948_v30 }
 0x40e   : > { %2408 = vrot.lane.b32.xlu1 %v9967_v51, %s9509_s6 }
 0x412   : > { %2406 = vrot.lane.b32.xlu1 %v9963_v35, %s9509_s6  ;;  %s9516_s6 = smov [#allocation8]  }
 0x486   : > { %v1950_v31 = vpop.xlane.xlu1 %1949 }
 0x487   : > { %9327 = vrcp.f32 %v1950_v31 }
 0x48a   : > { %v2409_v32 = vpop.permute.xlu1 %2408 }
 0x48b   : > { %v2412_v33 = vsel %vm1488_vm2, %v2409_v32, 0 }
 0x48c   : > { %v2445_v34 = vand.u32 4294901760, %v2412_v33 }
 0x48e   : > { %v2522_v37 = vsub.f32 %v2412_v33, %v2445_v34  ;;  %v2407_v39 = vpop.permute.xlu1 %2406 }
 0x48f   : > { %v2410_v43 = vsel %vm1488_vm2, %v2407_v39, 0 }
 0x490   : > { %v2523_v42 = vand.u32 4294901760, %v2522_v37  ;;  %v2480_v45 = vand.u32 4294901760, %v2410_v43 }
 0x492   : > { %v2524_v47 = vsub.f32 %v2522_v37, %v2523_v42  ;;  %v2481_v49 = vsub.f32 %v2410_v43, %v2480_v45 }
 0x494   : > { %v9328_v36 = vpop.eup %9327  ;;  %v2525_v52 = vand.u32 4294901760, %v2524_v47  ;;  %v2482_v53 = vand.u32 4294901760, %v2481_v49 }
 0x495   : > { %v1952_v38 = vmul.f32 %v9328_v36, %v9326_v29 }
 0x496   : > { %v2483_v54 = vsub.f32 %v2481_v49, %v2482_v53 }
 0x497   : > { %1953 = vst.msk [vmem:[%s10014_s12] sm:$0xff] %vm1488_vm2, %v1952_v38  ;;  %v1958_v40 = vsel %vm1488_vm2, %v1952_v38, 0 }
 0x498   : > { %v2026_v41 = vand.u32 4294901760, %v1958_v40  ;;  %v2484_v55 = vand.u32 4294901760, %v2483_v54 }
 0x49a   : > { %v2027_v44 = vsub.f32 %v1958_v40, %v2026_v41  ;;  %8743 = vmatmul.mubr.f32.vlgmr.msra.gmra.mxu1 %v2026_v41 }
 0x49b   : > { %8751 = vmatpush3.msra.mxu1 %v9990_v62  ;;  %8752 = vmatprep.mubr.msk.f32.mxu1 %vm9507_vm1, %v9506_v10 }
 0x49c   : > { %8760 = vmatprep.subr.mxu1 %v9506_v10  ;;  %v2028_v46 = vand.u32 4294901760, %v2027_v44 }
 0x49e   : > { %8753 = vmatmul.mubr.f32.vlgmr.msra.gmra.mxu1 %v2028_v46  ;;  %v2029_v48 = vsub.f32 %v2027_v44, %v2028_v46 }
 0x49f   : > { %8761 = vmatpush3.msra.mxu1 %v9990_v62  ;;  %8762 = vmatprep.mubr.msk.f32.mxu1 %vm9507_vm1, %v9506_v10 }
 0x4a0   : > { %8770 = vmatprep.subr.mxu1 %v9506_v10  ;;  %v2030_v50 = vand.u32 4294901760, %v2029_v48 }
 0x4a2   : > { %8738 = vmatmul.mubr.f32.vlgmr.msra.gmra.mxu0 %v2030_v50  ;;  %8763 = vmatmul.mubr.f32.vlgmr.msra.gmra.mxu1 %v2026_v41 }
 0x4a3   : > { %8746 = vmatpush3.msra.mxu0 %v9993_v63  ;;  %8771 = vmatpush3.xpose.msra.mxu1 %v2525_v52  ;;  %v1481_v52 = vld [vmem:[%s10723_s5 + $0x8] sm:$0xff] }
 0x4a4   : > { %8747 = vmatprep.mubr.msk.f32.mxu0 %vm9507_vm1, %v9506_v10  ;;  %8755 = vmatprep.subr.mxu0 %v9506_v10 }
 0x4a5   : > { %8772 = vmatprep.mubr.msk.f32.mxu1 %vm9507_vm1, %v9506_v10  ;;  %8780 = vmatprep.subr.mxu1 %v9506_v10 }
 0x4a6   : > { %8748 = vmatmul.mubr.f32.vlgmr.msra.gmra.mxu0 %v2027_v44  ;;  %8773 = vmatmul.mubr.f32.vlgmr.msra.gmra.mxu1 %v2480_v45 }
 0x4a7   : > { %8756 = vmatpush3.msra.mxu0 %v2069_v0  ;;  %8781 = vmatpush3.xpose.msra.mxu1 %v2445_v34 }
 0x4a8   : > { %8757 = vmatprep.mubr.msk.f32.mxu0 %vm9507_vm1, %v9506_v10  ;;  %8765 = vmatprep.subr.mxu0 %v9506_v10 }
 0x4a9   : > { %8782 = vmatprep.mubr.msk.f32.mxu1 %vm9507_vm1, %v9506_v10  ;;  %8790 = vmatprep.subr.mxu1 %v9506_v10 }
 0x4aa   : > { %8758 = vmatmul.mubr.f32.vlgmr.msra.gmra.mxu0 %v2026_v41  ;;  %8783 = vmatmul.mubr.f32.vlgmr.msra.gmra.mxu1 %v2482_v53  ;;  %v3360_v53 = vand.u32 4294901760, %v1481_v52 }
 0x4ab   : > { %8766 = vmatpush3.xpose.msra.mxu0 %v2445_v34  ;;  %8791 = vmatpush3.xpose.msra.mxu1 %v2445_v34 }
 0x4ac   : > { %8767 = vmatprep.mubr.msk.f32.mxu0 %vm9507_vm1, %v9506_v10  ;;  %8775 = vmatprep.subr.mxu0 %v9506_v10  ;;  %v10092_v54 = vsub.f32 %v1481_v52, %v3360_v53 }
 0x4ad   : > { %8792 = vmatprep.mubr.msk.f32.mxu1 %vm9507_vm1, %v9506_v10  ;;  %8800 = vmatprep.subr.mxu1 %v9506_v10 }
 0x4ae   : > { %8768 = vmatmul.mubr.f32.vlgmr.msra.gmra.mxu0 %v2484_v55  ;;  %8793 = vmatmul.mubr.f32.vlgmr.msra.gmra.mxu1 %v2480_v45  ;;  %v3438_v55 = vand.u32 4294901760, %v10092_v54 }
 0x4af   : > { %8776 = vmatpush3.xpose.msra.mxu0 %v2522_v37  ;;  %8777 = vmatprep.mubr.msk.f32.mxu0 %vm9507_vm1, %v9506_v10 }
 0x4b0   : > { %8785 = vmatprep.subr.mxu0 %v9506_v10  ;;  %8802 = vmatprep.mubr.msk.f32.mxu1 %vm9507_vm1, %v9506_v10 }
 0x4b2   : > { %8778 = vmatmul.mubr.f32.vlgmr.msra.gmra.mxu0 %v2481_v49 }
 0x4b3   : > { %8786 = vmatpush3.xpose.msra.mxu0 %v2523_v42  ;;  %8787 = vmatprep.mubr.msk.f32.mxu0 %vm9507_vm1, %v9506_v10 }
 0x4b4   : > { %8795 = vmatprep.subr.mxu0 %v9506_v10 }
 0x4b6   : > { %8788 = vmatmul.mubr.f32.vlgmr.msra.gmra.mxu0 %v2480_v45 }
 0x4b7   : > { %8797 = vmatprep.mubr.msk.f32.mxu0 %vm9507_vm1, %v9506_v10 }
 0x55a   : > { %v2108_v56 = vpop.f32.mrf.mxu1 }
 0x55c   : > { %v8744_v57 = vpop.f32.mrf.mxu1 }
 0x55e   : > { %v2256_v58 = vpop.f32.mrf.mxu1 }
 0x560   : > { %v8754_v59 = vpop.f32.mrf.mxu1 }
 0x562   : > { %v2032_v60 = vpop.f32.mrf.mxu0  ;;  %v2402_v61 = vpop.f32.mrf.mxu1 }
 0x563   : > { %v2109_v62 = vadd.f32 %v2108_v56, %v2032_v60  ;;  %v3439_v56 = vsub.f32 %v10092_v54, %v3438_v55 }
 0x564   : > { %v8739_v63 = vpop.f32.mrf.mxu0  ;;  %v8764_v0 = vpop.f32.mrf.mxu1 }
 0x565   : > { %v3440_v57 = vand.u32 4294901760, %v3439_v56 }
 0x566   : > { %v2182_v1 = vpop.f32.mrf.mxu0  ;;  %v2562_v2 = vpop.f32.mrf.mxu1 }
 0x567   : > { %v2183_v3 = vadd.f32 %v2182_v1, %v2109_v62 }
 0x568   : > { %v8749_v4 = vpop.f32.mrf.mxu0  ;;  %v8774_v5 = vpop.f32.mrf.mxu1 }
 0x569   : > { %v2257_v6 = vadd.f32 %v2256_v58, %v2183_v3  ;;  %v1480_v3 = vld [vmem:[%s10723_s5] sm:$0xff] }
 0x56a   : > { %v2330_v7 = vpop.f32.mrf.mxu0  ;;  %v2710_v8 = vpop.f32.mrf.mxu1 }
 0x56b   : > { %v2331_v9 = vadd.f32 %v2330_v7, %v2257_v6  ;;  %v3809_v7 = vand.u32 4294901760, %v1480_v3 }
 0x56c   : > { %v8759_v11 = vpop.f32.mrf.mxu0  ;;  %v8784_v12 = vpop.f32.mrf.mxu1 }
 0x56d   : > { %v10059_v13 = vadd.f32 %v2402_v61, %v2331_v9 }
 0x56e   : > { %v2486_v14 = vpop.f32.mrf.mxu0  ;;  %v2856_v15 = vpop.f32.mrf.mxu1 }
 0x56f   : > { %v2563_v19 = vadd.f32 %v2562_v2, %v2486_v14  ;;  %v10101_v14 = vsub.f32 %v1480_v3, %v3809_v7 }
 0x570   : > { %v8769_v16 = vpop.f32.mrf.mxu0  ;;  %v8794_v18 = vpop.f32.mrf.mxu1 }
 0x572   : > { %v2636_v20 = vpop.f32.mrf.mxu0 }
 0x573   : > { %v2637_v21 = vadd.f32 %v2636_v20, %v2563_v19  ;;  %v3887_v20 = vand.u32 4294901760, %v10101_v14 }
 0x574   : > { %v8779_v22 = vpop.f32.mrf.mxu0 }
 0x575   : > { %v2711_v23 = vadd.f32 %v2710_v8, %v2637_v21  ;;  %v3776_v21 = vsel %vm1488_vm2, %v10059_v13, 0 }
 0x576   : > { %v2784_v24 = vpop.f32.mrf.mxu0 }
 0x577   : > { %v2785_v25 = vadd.f32 %v2784_v24, %v2711_v23  ;;  %v10110_v24 = vand.u32 4294901760, %v3776_v21 }
 0x578   : > { %v8789_v26 = vpop.f32.mrf.mxu0 }
 0x579   : > { %v2857_v27 = vadd.f32 %v2856_v15, %v2785_v25  ;;  %v3888_v26 = vsub.f32 %v10101_v14, %v3887_v20 }
 0x57b   : > { %v2860_v28 = vsel %vm1487_vm3, -1e+09, %v2857_v27 }
 0x57c   : > { %v2861_v29 = vsel %vm1488_vm2, %v2860_v28, -inf }
 0x57d   : > { %2862 = vmax.xlane.f32.xlu1 %v2861_v29 }
 0x58e   : > { %4226 = vrot.lane.b32.xlu1 %v9967_v51, %s9510_s14 }
 0x592   : > { %4224 = vrot.lane.b32.xlu1 %v9963_v35, %s9510_s14 }
 0x606   : > { %v2863_v30 = vpop.xlane.xlu1 %2862 }
 0x607   : > { %v2864_v31 = vsub.f32 %v2860_v28, %v2863_v30  ;;  %v3845_v28 = vsub.f32 %v3776_v21, %v10110_v24  ;;  %v3889_v30 = vand.u32 4294901760, %v3888_v26 }
 0x609   : > { %v2865_v32 = vmul.f32 1.442695, %v2864_v31 }
 0x60a   : > { %v4227_v16 = vpop.permute.xlu1 %4226 }
 0x60b   : > { %9329 = vpow2.f32 %v2865_v32  ;;  %v4230_v22 = vsel %vm1488_vm2, %v4227_v16, 0 }
 0x60c   : > { %v10116_v27 = vand.u32 4294901760, %v4230_v22 }
 0x60e   : > { %v10123_v31 = vsub.f32 %v4230_v22, %v10116_v27  ;;  %v4225_v32 = vpop.permute.xlu1 %4224 }
 0x618   : > { %v9330_v33 = vpop.eup %9329 }
 0x619   : > { %v2867_v34 = vsel %vm1488_vm2, %v9330_v33, 0.0 }
 0x61a   : > { %2868 = vadd.xlane.f32.xlu0 %v2867_v34  ;;  %v4341_v34 = vand.u32 4294901760, %v10123_v31 }
 0x630   : > { %2874 = vrot.lane.b32.xlu0 %v9967_v51, %s9511_s22 }
 0x6a3   : > { %v2869_v36 = vpop.xlane.xlu0 %2868 }
 0x6a4   : > { %9331 = vrcp.f32 %v2869_v36  ;;  %v4228_v36 = vsel %vm1488_vm2, %v4225_v32, 0 }
 0x6a7   : > { %v2875_v37 = vpop.permute.xlu0 %2874 }
 0x6a8   : > { %v2911_v38 = vand.u32 4294901760, %v2875_v37 }
 0x6aa   : > { %v2988_v39 = vsub.f32 %v2875_v37, %v2911_v38  ;;  %8796 = vmatpush3.msra.mxu0 %v2911_v38  ;;  %v4298_v37 = vand.u32 4294901760, %v4228_v36 }
 0x6ab   : > { %8805 = vmatprep.subr.mxu0 %v9506_v10 }
 0x6ac   : > { %v2989_v40 = vand.u32 4294901760, %v2988_v39 }
 0x6ae   : > { %v2990_v41 = vsub.f32 %v2988_v39, %v2989_v40 }
 0x6b0   : > { %v2991_v42 = vand.u32 4294901760, %v2990_v41 }
 0x6b1   : > { %v9332_v43 = vpop.eup %9331 }
 0x6b2   : > { %8801 = vmatpush3.msra.mxu1 %v2991_v42  ;;  %v2871_v44 = vmul.f32 %v9332_v43, %v9330_v33  ;;  %v3846_v33 = vand.u32 4294901760, %v3845_v28 }
 0x6b3   : > { %8810 = vmatprep.subr.mxu1 %v9506_v10 }
 0x6b4   : > { %8269 = vst.msk [vmem:[%s10014_s12 + $0x8] sm:$0xff] %vm1488_vm2, %v2871_v44  ;;  %v2878_v45 = vsel %vm1488_vm2, %v2871_v44, 0 }
 0x6b5   : > { %v2946_v46 = vand.u32 4294901760, %v2878_v45 }
 0x6b7   : > { %v2947_v47 = vsub.f32 %v2878_v45, %v2946_v46  ;;  %8803 = vmatmul.mubr.f32.vlgmr.msra.gmra.mxu1 %v2946_v46 }
 0x6b8   : > { %8811 = vmatpush3.msra.mxu1 %v2911_v38  ;;  %8812 = vmatprep.mubr.msk.f32.mxu1 %vm9507_vm1, %v9506_v10 }
 0x6b9   : > { %8820 = vmatprep.subr.mxu1 %v9506_v10  ;;  %v2948_v48 = vand.u32 4294901760, %v2947_v47 }
 0x6bb   : > { %8813 = vmatmul.mubr.f32.vlgmr.msra.gmra.mxu1 %v2948_v48  ;;  %v2949_v49 = vsub.f32 %v2947_v47, %v2948_v48 }
 0x6bc   : > { %8821 = vmatpush3.msra.mxu1 %v2911_v38  ;;  %8822 = vmatprep.mubr.msk.f32.mxu1 %vm9507_vm1, %v9506_v10  ;;  %v3847_v38 = vsub.f32 %v3845_v28, %v3846_v33 }
 0x6bd   : > { %v2950_v50 = vand.u32 4294901760, %v2949_v49  ;;  %8830 = vmatprep.subr.mxu1 %v9506_v10 }
 0x6be   : > { %v3848_v41 = vand.u32 4294901760, %v3847_v38 }
 0x6bf   : > { %8798 = vmatmul.mubr.f32.vlgmr.msra.gmra.mxu0 %v2950_v50  ;;  %8823 = vmatmul.mubr.f32.vlgmr.msra.gmra.mxu1 %v2946_v46 }
 0x6c0   : > { %8806 = vmatpush3.msra.mxu0 %v2988_v39  ;;  %8807 = vmatprep.mubr.msk.f32.mxu0 %vm9507_vm1, %v9506_v10  ;;  %v4342_v39 = vsub.f32 %v10123_v31, %v4341_v34 }
 0x6c1   : > { %8815 = vmatprep.subr.mxu0 %v9506_v10  ;;  %8832 = vmatprep.mubr.msk.f32.mxu1 %vm9507_vm1, %v9506_v10 }
 0x6c2   : > { %8831 = vmatpush3.msra.mxu1 %v3440_v57  ;;  %v4343_v42 = vand.u32 4294901760, %v4342_v39 }
 0x6c3   : > { %8808 = vmatmul.mubr.f32.vlgmr.msra.gmra.mxu0 %v2947_v47  ;;  %8840 = vmatprep.subr.mxu1 %v9506_v10 }
 0x6c4   : > { %8816 = vmatpush3.msra.mxu0 %v2989_v40  ;;  %8817 = vmatprep.mubr.msk.f32.mxu0 %vm9507_vm1, %v9506_v10  ;;  %v4299_v40 = vsub.f32 %v4228_v36, %v4298_v37 }
 0x6c5   : > { %8825 = vmatprep.subr.mxu0 %v9506_v10 }
 0x6c6   : > { %v4300_v43 = vand.u32 4294901760, %v4299_v40 }
 0x6c7   : > { %8818 = vmatmul.mubr.f32.vlgmr.msra.gmra.mxu0 %v2946_v46 }
 0x6c8   : > { %8827 = vmatprep.mubr.msk.f32.mxu0 %vm9507_vm1, %v9506_v10  ;;  %8826 = vmatpush3.msra.mxu0 %v3360_v53  ;;  %v4301_v44 = vsub.f32 %v4299_v40, %v4300_v43 }
 0x6c9   : > { %8835 = vmatprep.subr.mxu0 %v9506_v10 }
 0x6ca   : > { %v4302_v45 = vand.u32 4294901760, %v4301_v44 }
 0x777   : > { %v3028_v58 = vpop.f32.mrf.mxu1 }
 0x779   : > { %v8804_v59 = vpop.f32.mrf.mxu1 }
 0x77b   : > { %v3176_v60 = vpop.f32.mrf.mxu1 }
 0x77d   : > { %v8814_v61 = vpop.f32.mrf.mxu1 }
 0x77f   : > { %v2952_v62 = vpop.f32.mrf.mxu0  ;;  %v3322_v63 = vpop.f32.mrf.mxu1 }
 0x780   : > { %v3029_v2 = vadd.f32 %v3028_v58, %v2952_v62 }
 0x781   : > { %v8799_v0 = vpop.f32.mrf.mxu0  ;;  %v8824_v1 = vpop.f32.mrf.mxu1 }
 0x783   : > { %v3102_v4 = vpop.f32.mrf.mxu0 }
 0x784   : > { %v3103_v5 = vadd.f32 %v3102_v4, %v3029_v2 }
 0x785   : > { %v8809_v6 = vpop.f32.mrf.mxu0 }
 0x786   : > { %v3177_v8 = vadd.f32 %v3176_v60, %v3103_v5 }
 0x787   : > { %v3250_v9 = vpop.f32.mrf.mxu0 }
 0x788   : > { %v3251_v11 = vadd.f32 %v3250_v9, %v3177_v8 }
 0x789   : > { %v8819_v12 = vpop.f32.mrf.mxu0 }
 0x78a   : > { %v3323_v15 = vadd.f32 %v3322_v63, %v3251_v11 }
 0x78c   : > { %v3327_v18 = vsel %vm1488_vm2, %v3323_v15, 0 }
 0x78d   : > { %v3395_v19 = vand.u32 4294901760, %v3327_v18 }
 0x78f   : > { %v3396_v23 = vsub.f32 %v3327_v18, %v3395_v19  ;;  %8833 = vmatmul.mubr.f32.vlgmr.msra.gmra.mxu1 %v3395_v19 }
 0x790   : > { %8841 = vmatpush3.msra.mxu1 %v3360_v53  ;;  %8842 = vmatprep.mubr.msk.f32.mxu1 %vm9507_vm1, %v9506_v10 }
 0x791   : > { %v3397_v25 = vand.u32 4294901760, %v3396_v23  ;;  %8850 = vmatprep.subr.mxu1 %v9506_v10 }
 0x793   : > { %8843 = vmatmul.mubr.f32.vlgmr.msra.gmra.mxu1 %v3397_v25  ;;  %v3398_v13 = vsub.f32 %v3396_v23, %v3397_v25 }
 0x794   : > { %8851 = vmatpush3.msra.mxu1 %v3360_v53  ;;  %8852 = vmatprep.mubr.msk.f32.mxu1 %vm9507_vm1, %v9506_v10 }
 0x795   : > { %v3399_v29 = vand.u32 4294901760, %v3398_v13  ;;  %8860 = vmatprep.subr.mxu1 %v9506_v10 }
 0x797   : > { %8828 = vmatmul.mubr.f32.vlgmr.msra.gmra.mxu0 %v3399_v29  ;;  %8853 = vmatmul.mubr.f32.vlgmr.msra.gmra.mxu1 %v3395_v19 }
 0x798   : > { %8836 = vmatpush3.msra.mxu0 %v10092_v54  ;;  %8837 = vmatprep.mubr.msk.f32.mxu0 %vm9507_vm1, %v9506_v10 }
 0x799   : > { %8861 = vmatpush3.msra.mxu1 %v3889_v30  ;;  %8862 = vmatprep.mubr.msk.f32.mxu1 %vm9507_vm1, %v9506_v10 }
 0x79a   : > { %8845 = vmatprep.subr.mxu0 %v9506_v10  ;;  %8870 = vmatprep.subr.mxu1 %v9506_v10 }
 0x79b   : > { %8838 = vmatmul.mubr.f32.vlgmr.msra.gmra.mxu0 %v3396_v23  ;;  %8863 = vmatmul.mubr.f32.vlgmr.msra.gmra.mxu1 %v10110_v24 }
 0x79c   : > { %8846 = vmatpush3.msra.mxu0 %v3438_v55  ;;  %8847 = vmatprep.mubr.msk.f32.mxu0 %vm9507_vm1, %v9506_v10 }
 0x79d   : > { %8871 = vmatpush3.msra.mxu1 %v3809_v7  ;;  %8872 = vmatprep.mubr.msk.f32.mxu1 %vm9507_vm1, %v9506_v10 }
 0x79e   : > { %8855 = vmatprep.subr.mxu0 %v9506_v10  ;;  %8880 = vmatprep.subr.mxu1 %v9506_v10 }
 0x79f   : > { %8848 = vmatmul.mubr.f32.vlgmr.msra.gmra.mxu0 %v3395_v19  ;;  %8873 = vmatmul.mubr.f32.vlgmr.msra.gmra.mxu1 %v3846_v33 }
 0x7a0   : > { %8856 = vmatpush3.msra.mxu0 %v3809_v7  ;;  %8881 = vmatpush3.msra.mxu1 %v3809_v7 }
 0x7a1   : > { %8857 = vmatprep.mubr.msk.f32.mxu0 %vm9507_vm1, %v9506_v10  ;;  %8882 = vmatprep.mubr.msk.f32.mxu1 %vm9507_vm1, %v9506_v10 }
 0x7a2   : > { %8890 = vmatprep.subr.mxu1 %v9506_v10  ;;  %8865 = vmatprep.subr.mxu0 %v9506_v10 }
 0x7a3   : > { %8858 = vmatmul.mubr.f32.vlgmr.msra.gmra.mxu0 %v3848_v41  ;;  %8883 = vmatmul.mubr.f32.vlgmr.msra.gmra.mxu1 %v10110_v24 }
 0x7a4   : > { %8891 = vmatpush3.xpose.msra.mxu1 %v4343_v42  ;;  %8866 = vmatpush3.msra.mxu0 %v10101_v14 }
 0x7a5   : > { %8867 = vmatprep.mubr.msk.f32.mxu0 %vm9507_vm1, %v9506_v10  ;;  %8892 = vmatprep.mubr.msk.f32.mxu1 %vm9507_vm1, %v9506_v10 }
 0x7a6   : > { %8900 = vmatprep.subr.mxu1 %v9506_v10  ;;  %8875 = vmatprep.subr.mxu0 %v9506_v10 }
 0x7a7   : > { %8868 = vmatmul.mubr.f32.vlgmr.msra.gmra.mxu0 %v3845_v28  ;;  %8893 = vmatmul.mubr.f32.vlgmr.msra.gmra.mxu1 %v4298_v37 }
 0x7a8   : > { %8901 = vmatpush3.xpose.msra.mxu1 %v10116_v27  ;;  %8876 = vmatpush3.msra.mxu0 %v3887_v20 }
 0x7a9   : > { %8877 = vmatprep.mubr.msk.f32.mxu0 %vm9507_vm1, %v9506_v10  ;;  %8885 = vmatprep.subr.mxu0 %v9506_v10 }
 0x7aa   : > { %8902 = vmatprep.mubr.msk.f32.mxu1 %vm9507_vm1, %v9506_v10  ;;  %8910 = vmatprep.subr.mxu1 %v9506_v10 }
 0x7ab   : > { %8878 = vmatmul.mubr.f32.vlgmr.msra.gmra.mxu0 %v10110_v24  ;;  %8903 = vmatmul.mubr.f32.vlgmr.msra.gmra.mxu1 %v4300_v43 }
 0x7ac   : > { %8886 = vmatpush3.xpose.msra.mxu0 %v10116_v27  ;;  %8911 = vmatpush3.xpose.msra.mxu1 %v10116_v27 }
 0x7ad   : > { %8887 = vmatprep.mubr.msk.f32.mxu0 %vm9507_vm1, %v9506_v10  ;;  %8895 = vmatprep.subr.mxu0 %v9506_v10 }
 0x7ae   : > { %8912 = vmatprep.mubr.msk.f32.mxu1 %vm9507_vm1, %v9506_v10  ;;  %8920 = vmatprep.subr.mxu1 %v9506_v10 }
 0x7af   : > { %8888 = vmatmul.mubr.f32.vlgmr.msra.gmra.mxu0 %v4302_v45  ;;  %8913 = vmatmul.mubr.f32.vlgmr.msra.gmra.mxu1 %v4298_v37 }
 0x7b0   : > { %8896 = vmatpush3.xpose.msra.mxu0 %v10123_v31  ;;  %8897 = vmatprep.mubr.msk.f32.mxu0 %vm9507_vm1, %v9506_v10 }
 0x7b1   : > { %8905 = vmatprep.subr.mxu0 %v9506_v10  ;;  %8922 = vmatprep.mubr.msk.f32.mxu1 %vm9507_vm1, %v9506_v10 }
 0x7b3   : > { %8898 = vmatmul.mubr.f32.vlgmr.msra.gmra.mxu0 %v4299_v40 }
 0x7b4   : > { %8906 = vmatpush3.xpose.msra.mxu0 %v4341_v34  ;;  %8907 = vmatprep.mubr.msk.f32.mxu0 %vm9507_vm1, %v9506_v10 }
 0x7b5   : > { %8915 = vmatprep.subr.mxu0 %v9506_v10 }
 0x7b7   : > { %8908 = vmatmul.mubr.f32.vlgmr.msra.gmra.mxu0 %v4298_v37 }
 0x7b8   : > { %8917 = vmatprep.mubr.msk.f32.mxu0 %vm9507_vm1, %v9506_v10 }
 0x84f   : > { %v3477_v46 = vpop.f32.mrf.mxu1 }
 0x851   : > { %v8834_v47 = vpop.f32.mrf.mxu1 }
 0x853   : > { %v3625_v48 = vpop.f32.mrf.mxu1 }
 0x855   : > { %v8844_v49 = vpop.f32.mrf.mxu1 }
 0x857   : > { %v3401_v50 = vpop.f32.mrf.mxu0  ;;  %v3771_v52 = vpop.f32.mrf.mxu1 }
 0x858   : > { %v3478_v53 = vadd.f32 %v3477_v46, %v3401_v50 }
 0x859   : > { %v8829_v54 = vpop.f32.mrf.mxu0  ;;  %v8854_v55 = vpop.f32.mrf.mxu1 }
 0x85b   : > { %v3551_v56 = vpop.f32.mrf.mxu0  ;;  %v3926_v57 = vpop.f32.mrf.mxu1 }
 0x85c   : > { %v3552_v58 = vadd.f32 %v3551_v56, %v3478_v53 }
 0x85d   : > { %v8839_v59 = vpop.f32.mrf.mxu0  ;;  %v8864_v60 = vpop.f32.mrf.mxu1 }
 0x85e   : > { %v3626_v61 = vadd.f32 %v3625_v48, %v3552_v58  ;;  %v1482_v60 = vld [vmem:[%s10723_s5 + $0x10] sm:$0xff] }
 0x85f   : > { %v3699_v62 = vpop.f32.mrf.mxu0  ;;  %v4074_v63 = vpop.f32.mrf.mxu1 }
 0x860   : > { %v3700_v0 = vadd.f32 %v3699_v62, %v3626_v61  ;;  %v5178_v61 = vand.u32 4294901760, %v1482_v60 }
 0x861   : > { %v8849_v1 = vpop.f32.mrf.mxu0  ;;  %v8874_v2 = vpop.f32.mrf.mxu1 }
 0x862   : > { %v3772_v3 = vadd.f32 %v3771_v52, %v3700_v0  ;;  %v5255_v62 = vsub.f32 %v1482_v60, %v5178_v61 }
 0x863   : > { %v3850_v4 = vpop.f32.mrf.mxu0  ;;  %v4220_v5 = vpop.f32.mrf.mxu1 }
 0x864   : > { %v3851_v6 = vadd.f32 %v3850_v4, %v3772_v3 }
 0x865   : > { %v8859_v7 = vpop.f32.mrf.mxu0  ;;  %v8884_v8 = vpop.f32.mrf.mxu1 }
 0x866   : > { %v3927_v9 = vadd.f32 %v3926_v57, %v3851_v6 }
 0x867   : > { %v4000_v11 = vpop.f32.mrf.mxu0  ;;  %v4380_v12 = vpop.f32.mrf.mxu1 }
 0x868   : > { %v4001_v14 = vadd.f32 %v4000_v11, %v3927_v9 }
 0x869   : > { %v8869_v15 = vpop.f32.mrf.mxu0  ;;  %v8894_v16 = vpop.f32.mrf.mxu1 }
 0x86a   : > { %v4075_v18 = vadd.f32 %v4074_v63, %v4001_v14  ;;  %v5256_v63 = vand.u32 4294901760, %v5255_v62 }
 0x86b   : > { %v4148_v19 = vpop.f32.mrf.mxu0  ;;  %v4528_v20 = vpop.f32.mrf.mxu1 }
 0x86c   : > { %v4149_v21 = vadd.f32 %v4148_v19, %v4075_v18  ;;  %v5257_v0 = vsub.f32 %v5255_v62, %v5256_v63 }
 0x86d   : > { %v8879_v22 = vpop.f32.mrf.mxu0  ;;  %v8904_v23 = vpop.f32.mrf.mxu1 }
 0x86e   : > { %v10185_v24 = vadd.f32 %v4220_v5, %v4149_v21  ;;  %v5258_v1 = vand.u32 4294901760, %v5257_v0 }
 0x86f   : > { %v4304_v25 = vpop.f32.mrf.mxu0  ;;  %v4674_v26 = vpop.f32.mrf.mxu1 }
 0x870   : > { %v4381_v28 = vadd.f32 %v4380_v12, %v4304_v25 }
 0x871   : > { %v8889_v27 = vpop.f32.mrf.mxu0  ;;  %v8914_v13 = vpop.f32.mrf.mxu1 }
 0x873   : > { %v4454_v29 = vpop.f32.mrf.mxu0 }
 0x874   : > { %v4455_v30 = vadd.f32 %v4454_v29, %v4381_v28 }
 0x875   : > { %v8899_v31 = vpop.f32.mrf.mxu0 }
 0x876   : > { %v4529_v32 = vadd.f32 %v4528_v20, %v4455_v30 }
 0x877   : > { %v4602_v33 = vpop.f32.mrf.mxu0 }
 0x878   : > { %v4603_v34 = vadd.f32 %v4602_v33, %v4529_v32 }
 0x879   : > { %v8909_v36 = vpop.f32.mrf.mxu0 }
 0x87a   : > { %v4675_v37 = vadd.f32 %v4674_v26, %v4603_v34 }
 0x87c   : > { %v4678_v38 = vsel %vm1487_vm3, -1e+09, %v4675_v37 }
 0x87d   : > { %v4679_v39 = vsel %vm1488_vm2, %v4678_v38, -inf }
 0x87e   : > { %4680 = vmax.xlane.f32.xlu0 %v4679_v39 }
 0x894   : > { %4692 = vrot.lane.b32.xlu0 %v9967_v51, %s9512_s10  ;;  %s10322_s10 = scalar_lea.vmem [#allocation7], %s8263_s29 }
 0x898   : > { %5594 = vrot.lane.b32.xlu0 %v9963_v35, %s9513_s24 }
 0x907   : > { %v4681_v40 = vpop.xlane.xlu0 %4680 }
 0x908   : > { %v4682_v41 = vsub.f32 %v4678_v38, %v4681_v40 }
 0x90a   : > { %v4683_v42 = vmul.f32 1.442695, %v4682_v41 }
 0x90b   : > { %v4693_v43 = vpop.permute.xlu0 %4692 }
 0x90c   : > { %9333 = vpow2.f32 %v4683_v42  ;;  %v4729_v44 = vand.u32 4294901760, %v4693_v43 }
 0x90e   : > { %v4806_v45 = vsub.f32 %v4693_v43, %v4729_v44  ;;  %8916 = vmatpush3.msra.mxu0 %v4729_v44 }
 0x90f   : > { %8925 = vmatprep.subr.mxu0 %v9506_v10  ;;  %v5595_v27 = vpop.permute.xlu0 %5594 }
 0x910   : > { %v4807_v46 = vand.u32 4294901760, %v4806_v45  ;;  %v5598_v29 = vsel %vm1488_vm2, %v5595_v27, 0 }
 0x911   : > { %v5668_v32 = vand.u32 4294901760, %v5598_v29 }
 0x912   : > { %v4808_v47 = vsub.f32 %v4806_v45, %v4807_v46 }
 0x913   : > { %v5669_v37 = vsub.f32 %v5598_v29, %v5668_v32 }
 0x914   : > { %v4809_v48 = vand.u32 4294901760, %v4808_v47 }
 0x915   : > { %v5670_v40 = vand.u32 4294901760, %v5669_v37 }
 0x916   : > { %8921 = vmatpush3.msra.mxu1 %v4809_v48 }
 0x917   : > { %8930 = vmatprep.subr.mxu1 %v9506_v10  ;;  %v5671_v41 = vsub.f32 %v5669_v37, %v5670_v40 }
 0x919   : > { %v9334_v49 = vpop.eup %9333  ;;  %v5672_v42 = vand.u32 4294901760, %v5671_v41 }
 0x91a   : > { %v4685_v35 = vsel %vm1488_vm2, %v9334_v49, 0.0 }
 0x91b   : > { %4686 = vadd.xlane.f32.xlu1 %v4685_v35 }
 0x92c   : > { %5596 = vrot.lane.b32.xlu1 %v9967_v51, %s9513_s24  ;;  %s8089_s24 = scalar_lea.sflag [#allocation9], %s9687_s15 }
 0x9a4   : > { %v4687_v50 = vpop.xlane.xlu1 %4686 }
 0x9a5   : > { %9335 = vrcp.f32 %v4687_v50 }
 0x9a8   : > { %v5597_v8 = vpop.permute.xlu1 %5596 }
 0x9a9   : > { %v5600_v14 = vsel %vm1488_vm2, %v5597_v8, 0 }
 0x9aa   : > { %v5633_v19 = vand.u32 4294901760, %v5600_v14 }
 0x9ac   : > { %v5710_v25 = vsub.f32 %v5600_v14, %v5633_v19 }
 0x9ae   : > { %v5711_v30 = vand.u32 4294901760, %v5710_v25 }
 0x9b0   : > { %v5712_v34 = vsub.f32 %v5710_v25, %v5711_v30 }
 0x9b2   : > { %v9336_v52 = vpop.eup %9335  ;;  %v5713_v39 = vand.u32 4294901760, %v5712_v34 }
 0x9b3   : > { %v4689_v53 = vmul.f32 %v9336_v52, %v9334_v49 }
 0x9b5   : > { %8270 = vst.msk [vmem:[%s10014_s12 + $0x10] sm:$0xff] %vm1488_vm2, %v4689_v53  ;;  %v4696_v54 = vsel %vm1488_vm2, %v4689_v53, 0 }
 0x9b6   : > { %v4764_v55 = vand.u32 4294901760, %v4696_v54 }
 0x9b8   : > { %v4765_v56 = vsub.f32 %v4696_v54, %v4764_v55  ;;  %8923 = vmatmul.mubr.f32.vlgmr.msra.gmra.mxu1 %v4764_v55 }
 0x9b9   : > { %8931 = vmatpush3.msra.mxu1 %v4729_v44  ;;  %8932 = vmatprep.mubr.msk.f32.mxu1 %vm9507_vm1, %v9506_v10 }
 0x9ba   : > { %8940 = vmatprep.subr.mxu1 %v9506_v10  ;;  %v4766_v57 = vand.u32 4294901760, %v4765_v56 }
 0x9bc   : > { %8933 = vmatmul.mubr.f32.vlgmr.msra.gmra.mxu1 %v4766_v57  ;;  %v4767_v58 = vsub.f32 %v4765_v56, %v4766_v57 }
 0x9bd   : > { %8941 = vmatpush3.msra.mxu1 %v4729_v44  ;;  %8942 = vmatprep.mubr.msk.f32.mxu1 %vm9507_vm1, %v9506_v10 }
 0x9be   : > { %v4768_v59 = vand.u32 4294901760, %v4767_v58  ;;  %8950 = vmatprep.subr.mxu1 %v9506_v10 }
 0x9c0   : > { %8918 = vmatmul.mubr.f32.vlgmr.msra.gmra.mxu0 %v4768_v59  ;;  %8943 = vmatmul.mubr.f32.vlgmr.msra.gmra.mxu1 %v4764_v55 }
 0x9c1   : > { %8926 = vmatpush3.msra.mxu0 %v4806_v45  ;;  %8927 = vmatprep.mubr.msk.f32.mxu0 %vm9507_vm1, %v9506_v10 }
 0x9c2   : > { %8935 = vmatprep.subr.mxu0 %v9506_v10  ;;  %8952 = vmatprep.mubr.msk.f32.mxu1 %vm9507_vm1, %v9506_v10 }
 0x9c3   : > { %8951 = vmatpush3.msra.mxu1 %v5258_v1 }
 0x9c4   : > { %8928 = vmatmul.mubr.f32.vlgmr.msra.gmra.mxu0 %v4765_v56  ;;  %8960 = vmatprep.subr.mxu1 %v9506_v10 }
 0x9c5   : > { %8936 = vmatpush3.msra.mxu0 %v4807_v46  ;;  %8937 = vmatprep.mubr.msk.f32.mxu0 %vm9507_vm1, %v9506_v10 }
 0x9c6   : > { %8945 = vmatprep.subr.mxu0 %v9506_v10 }
 0x9c8   : > { %8938 = vmatmul.mubr.f32.vlgmr.msra.gmra.mxu0 %v4764_v55 }
 0x9c9   : > { %8947 = vmatprep.mubr.msk.f32.mxu0 %vm9507_vm1, %v9506_v10  ;;  %8946 = vmatpush3.msra.mxu0 %v5178_v61 }
 0x9ca   : > { %8955 = vmatprep.subr.mxu0 %v9506_v10 }
 0xa78   : > { %v4846_v2 = vpop.f32.mrf.mxu1 }
 0xa7a   : > { %v8924_v3 = vpop.f32.mrf.mxu1 }
 0xa7c   : > { %v4994_v4 = vpop.f32.mrf.mxu1 }
 0xa7e   : > { %v8934_v5 = vpop.f32.mrf.mxu1 }
 0xa80   : > { %v4770_v6 = vpop.f32.mrf.mxu0  ;;  %v5140_v7 = vpop.f32.mrf.mxu1 }
 0xa81   : > { %v4847_v12 = vadd.f32 %v4846_v2, %v4770_v6 }
 0xa82   : > { %v8919_v9 = vpop.f32.mrf.mxu0  ;;  %v8944_v11 = vpop.f32.mrf.mxu1 }
 0xa84   : > { %v4920_v15 = vpop.f32.mrf.mxu0 }
 0xa85   : > { %v4921_v16 = vadd.f32 %v4920_v15, %v4847_v12 }
 0xa86   : > { %v8929_v18 = vpop.f32.mrf.mxu0 }
 0xa87   : > { %v4995_v20 = vadd.f32 %v4994_v4, %v4921_v16 }
 0xa88   : > { %v5068_v21 = vpop.f32.mrf.mxu0 }
 0xa89   : > { %v5069_v22 = vadd.f32 %v5068_v21, %v4995_v20 }
 0xa8a   : > { %v8939_v23 = vpop.f32.mrf.mxu0 }
 0xa8b   : > { %v5141_v26 = vadd.f32 %v5140_v7, %v5069_v22 }
 0xa8d   : > { %v5145_v13 = vsel %vm1488_vm2, %v5141_v26, 0 }
 0xa8e   : > { %v5213_v28 = vand.u32 4294901760, %v5145_v13 }
 0xa90   : > { %v5214_v31 = vsub.f32 %v5145_v13, %v5213_v28  ;;  %8953 = vmatmul.mubr.f32.vlgmr.msra.gmra.mxu1 %v5213_v28 }
 0xa91   : > { %8961 = vmatpush3.msra.mxu1 %v5178_v61  ;;  %8962 = vmatprep.mubr.msk.f32.mxu1 %vm9507_vm1, %v9506_v10 }
 0xa92   : > { %v5215_v33 = vand.u32 4294901760, %v5214_v31  ;;  %8970 = vmatprep.subr.mxu1 %v9506_v10 }
 0xa94   : > { %8963 = vmatmul.mubr.f32.vlgmr.msra.gmra.mxu1 %v5215_v33  ;;  %v5216_v36 = vsub.f32 %v5214_v31, %v5215_v33 }
 0xa95   : > { %8971 = vmatpush3.msra.mxu1 %v5178_v61  ;;  %8972 = vmatprep.mubr.msk.f32.mxu1 %vm9507_vm1, %v9506_v10 }
 0xa96   : > { %8980 = vmatprep.subr.mxu1 %v9506_v10  ;;  %v5217_v38 = vand.u32 4294901760, %v5216_v36 }
 0xa98   : > { %8948 = vmatmul.mubr.f32.vlgmr.msra.gmra.mxu0 %v5217_v38  ;;  %8973 = vmatmul.mubr.f32.vlgmr.msra.gmra.mxu1 %v5213_v28 }
 0xa99   : > { %8981 = vmatpush3.xpose.msra.mxu1 %v5713_v39  ;;  %8956 = vmatpush3.msra.mxu0 %v5255_v62 }
 0xa9a   : > { %8957 = vmatprep.mubr.msk.f32.mxu0 %vm9507_vm1, %v9506_v10  ;;  %8982 = vmatprep.mubr.msk.f32.mxu1 %vm9507_vm1, %v9506_v10 }
 0xa9b   : > { %8990 = vmatprep.subr.mxu1 %v9506_v10  ;;  %8965 = vmatprep.subr.mxu0 %v9506_v10 }
 0xa9c   : > { %8958 = vmatmul.mubr.f32.vlgmr.msra.gmra.mxu0 %v5214_v31  ;;  %8983 = vmatmul.mubr.f32.vlgmr.msra.gmra.mxu1 %v5668_v32 }
 0xa9d   : > { %8991 = vmatpush3.xpose.msra.mxu1 %v5633_v19  ;;  %8966 = vmatpush3.msra.mxu0 %v5256_v63 }
 0xa9e   : > { %8967 = vmatprep.mubr.msk.f32.mxu0 %vm9507_vm1, %v9506_v10  ;;  %8975 = vmatprep.subr.mxu0 %v9506_v10 }
 0xa9f   : > { %8992 = vmatprep.mubr.msk.f32.mxu1 %vm9507_vm1, %v9506_v10  ;;  %9000 = vmatprep.subr.mxu1 %v9506_v10 }
 0xaa0   : > { %8968 = vmatmul.mubr.f32.vlgmr.msra.gmra.mxu0 %v5213_v28  ;;  %8993 = vmatmul.mubr.f32.vlgmr.msra.gmra.mxu1 %v5670_v40 }
 0xaa1   : > { %8976 = vmatpush3.xpose.msra.mxu0 %v5633_v19  ;;  %9001 = vmatpush3.xpose.msra.mxu1 %v5633_v19 }
 0xaa2   : > { %8977 = vmatprep.mubr.msk.f32.mxu0 %vm9507_vm1, %v9506_v10  ;;  %8985 = vmatprep.subr.mxu0 %v9506_v10 }
 0xaa3   : > { %9002 = vmatprep.mubr.msk.f32.mxu1 %vm9507_vm1, %v9506_v10  ;;  %9010 = vmatprep.subr.mxu1 %v9506_v10 }
 0xaa4   : > { %8978 = vmatmul.mubr.f32.vlgmr.msra.gmra.mxu0 %v5672_v42  ;;  %9003 = vmatmul.mubr.f32.vlgmr.msra.gmra.mxu1 %v5668_v32 }
 0xaa5   : > { %8986 = vmatpush3.xpose.msra.mxu0 %v5710_v25  ;;  %8987 = vmatprep.mubr.msk.f32.mxu0 %vm9507_vm1, %v9506_v10 }
 0xaa6   : > { %8995 = vmatprep.subr.mxu0 %v9506_v10  ;;  %9012 = vmatprep.mubr.msk.f32.mxu1 %vm9507_vm1, %v9506_v10 }
 0xaa8   : > { %8988 = vmatmul.mubr.f32.vlgmr.msra.gmra.mxu0 %v5669_v37  ;;  %v1483_v37 = vld [vmem:[%s10723_s5 + $0x18] sm:$0xff] }
 0xaa9   : > { %8996 = vmatpush3.xpose.msra.mxu0 %v5711_v30  ;;  %8997 = vmatprep.mubr.msk.f32.mxu0 %vm9507_vm1, %v9506_v10  ;;  %v6548_v38 = vand.u32 4294901760, %v1483_v37 }
 0xaaa   : > { %9005 = vmatprep.subr.mxu0 %v9506_v10 }
 0xaab   : > { %v6625_v39 = vsub.f32 %v1483_v37, %v6548_v38  ;;  %v7003_v37 = vld [vmem:[#allocation5 + $0x10] sm:$0xff] }
 0xaac   : > { %8998 = vmatmul.mubr.f32.vlgmr.msra.gmra.mxu0 %v5668_v32 }
 0xaad   : > { %9007 = vmatprep.mubr.msk.f32.mxu0 %vm9507_vm1, %v9506_v10  ;;  %v6626_v40 = vand.u32 4294901760, %v6625_v39 }
 0xaaf   : > { %v6627_v41 = vsub.f32 %v6625_v39, %v6626_v40 }
 0xab1   : > { %v6628_v42 = vand.u32 4294901760, %v6627_v41 }
 0xb50   : > { %v5295_v43 = vpop.f32.mrf.mxu1 }
 0xb52   : > { %v8954_v44 = vpop.f32.mrf.mxu1 }
 0xb53   : > { %v463_v44 = vld [vmem:[%s461_s27] sm:$0xff]  ;;  %s8284_s27 = sshll.u32 %s9601_s21, 9 }
 0xb54   : > { %v5443_v45 = vpop.f32.mrf.mxu1 }
 0xb56   : > { %v8964_v46 = vpop.f32.mrf.mxu1 }
 0xb58   : > { %v5219_v47 = vpop.f32.mrf.mxu0  ;;  %v5589_v48 = vpop.f32.mrf.mxu1 }
 0xb59   : > { %v5296_v49 = vadd.f32 %v5295_v43, %v5219_v47  ;;  %v9515_v43 = vmov 0  }
 0xb5a   : > { %v8949_v35 = vpop.f32.mrf.mxu0  ;;  %v8974_v50 = vpop.f32.mrf.mxu1  ;;  %9321 = vset.pattern.permute.xlu1 %v9515_v43  ;;  %9322 = vset.pattern.permute.xlu0 %v9515_v43 }
 0xb5c   : > { %v5369_v52 = vpop.f32.mrf.mxu0  ;;  %v5750_v53 = vpop.f32.mrf.mxu1 }
 0xb5d   : > { %v5370_v54 = vadd.f32 %v5369_v52, %v5296_v49 }
 0xb5e   : > { %v8959_v55 = vpop.f32.mrf.mxu0  ;;  %v8984_v56 = vpop.f32.mrf.mxu1 }
 0xb5f   : > { %v5444_v57 = vadd.f32 %v5443_v45, %v5370_v54 }
 0xb60   : > { %v5517_v58 = vpop.f32.mrf.mxu0  ;;  %v5898_v59 = vpop.f32.mrf.mxu1 }
 0xb61   : > { %v5518_v60 = vadd.f32 %v5517_v58, %v5444_v57 }
 0xb62   : > { %v8969_v61 = vpop.f32.mrf.mxu0  ;;  %v8994_v62 = vpop.f32.mrf.mxu1 }
 0xb63   : > { %v5590_v63 = vadd.f32 %v5589_v48, %v5518_v60 }
 0xb64   : > { %v5674_v0 = vpop.f32.mrf.mxu0  ;;  %v6044_v1 = vpop.f32.mrf.mxu1 }
 0xb65   : > { %v10258_v2 = vadd.f32 %v5590_v63, %v10185_v24  ;;  %v5751_v5 = vadd.f32 %v5750_v53, %v5674_v0 }
 0xb66   : > { %v8979_v3 = vpop.f32.mrf.mxu0  ;;  %v9004_v4 = vpop.f32.mrf.mxu1 }
 0xb68   : > { %v5824_v6 = vpop.f32.mrf.mxu0 }
 0xb69   : > { %v5825_v7 = vadd.f32 %v5824_v6, %v5751_v5 }
 0xb6a   : > { %v8989_v8 = vpop.f32.mrf.mxu0 }
 0xb6b   : > { %v5899_v9 = vadd.f32 %v5898_v59, %v5825_v7 }
 0xb6c   : > { %v5972_v11 = vpop.f32.mrf.mxu0 }
 0xb6d   : > { %v5973_v12 = vadd.f32 %v5972_v11, %v5899_v9 }
 0xb6e   : > { %v8999_v14 = vpop.f32.mrf.mxu0 }
 0xb6f   : > { %v6045_v15 = vadd.f32 %v6044_v1, %v5973_v12 }
 0xb71   : > { %v6048_v16 = vsel %vm1487_vm3, -1e+09, %v6045_v15 }
 0xb72   : > { %v6049_v18 = vsel %vm1488_vm2, %v6048_v16, -inf }
 0xb73   : > { %6050 = vmax.xlane.f32.xlu1 %v6049_v18 }
 0xb84   : > { %6972 = vperm.xlu1 %9321, %v463_v44  }
 0xbfc   : > { %v6051_v19 = vpop.xlane.xlu1 %6050 }
 0xbfd   : > { %v6052_v24 = vsub.f32 %v6048_v16, %v6051_v19 }
 0xbff   : > { %v6053_v20 = vmul.f32 1.442695, %v6052_v24 }
 0xc01   : > { %9337 = vpow2.f32 %v6053_v20 }
 0xc0e   : > { %v9338_v21 = vpop.eup %9337 }
 0xc0f   : > { %v6055_v22 = vsel %vm1488_vm2, %v9338_v21, 0.0 }
 0xc10   : > { %6056 = vadd.xlane.f32.xlu0 %v6055_v22 }
 0xc26   : > { %6062 = vrot.lane.b32.xlu0 %v9967_v51, %s9514_s30  ;;  %s9406_s30 = sshll.u32 %s9516_s6, 4  ;;  %s9407_s30 = int_to_ptr.vmem [resolvable:$false] %s9406_s30 }
 0xc27   : > { %p9409_p2 = scmp.lt.s32.totalorder %s10650_s25, %s9407_s30 }
 0xc99   : > { %v6057_v23 = vpop.xlane.xlu0 %6056 }
 0xc9a   : > { %9339 = vrcp.f32 %v6057_v23 }
 0xc9d   : > { %v6063_v25 = vpop.permute.xlu0 %6062 }
 0xc9e   : > { %v6099_v17 = vand.u32 4294901760, %v6063_v25 }
 0xca0   : > { %v6176_v26 = vsub.f32 %v6063_v25, %v6099_v17  ;;  %9006 = vmatpush3.msra.mxu0 %v6099_v17  ;;  %v8272_v25 = vld [vmem:[%s10727_s9 + $0x2] ss:$0 sm:$0xff] }
 0xca1   : > { %9015 = vmatprep.subr.mxu0 %v9506_v10 }
 0xca2   : > { %v6177_v27 = vand.u32 4294901760, %v6176_v26 }
 0xca4   : > { %v6178_v13 = vsub.f32 %v6176_v26, %v6177_v27 }
 0xca6   : > { %v6179_v28 = vand.u32 4294901760, %v6178_v13  ;;  %v9347_v13 = vld [vmem:[%s9711_s23] sm:$0xff]  ;;  %s10648_s23 = scalar_lea.hbm %s10729_s11, %s8284_s27 }
 0xca7   : > { %v9340_v29 = vpop.eup %9339 }
 0xca8   : > { %9011 = vmatpush3.msra.mxu1 %v6179_v28  ;;  %v6059_v30 = vmul.f32 %v9340_v29, %v9338_v21 }
 0xca9   : > { %9020 = vmatprep.subr.mxu1 %v9506_v10 }
 0xcaa   : > { %8271 = vst.msk [vmem:[%s10014_s12 + $0x18] sm:$0xff] %vm1488_vm2, %v6059_v30  ;;  %v6066_v51 = vsel %vm1488_vm2, %v6059_v30, 0  ;;  %s9408_s12 = scalar_lea.vmem %s9407_s30, 1024 }
 0xcab   : > { %v6134_v31 = vand.u32 4294901760, %v6066_v51  ;;  %p9410_p13 = scmp.lt.s32.totalorder %s9408_s12, %s9402_s16 }
 0xcad   : > { %v6135_v32 = vsub.f32 %v6066_v51, %v6134_v31  ;;  %9013 = vmatmul.mubr.f32.vlgmr.msra.gmra.mxu1 %v6134_v31  ;;  %p9411_p0 = por %p9410_p13, %p9409_p2 }
 0xcae   : > { %9021 = vmatpush3.msra.mxu1 %v6099_v17  ;;  %9022 = vmatprep.mubr.msk.f32.mxu1 %vm9507_vm1, %v9506_v10 }
 0xcaf   : > { %9030 = vmatprep.subr.mxu1 %v9506_v10  ;;  %v6136_v33 = vand.u32 4294901760, %v6135_v32  ;;  %p9412_p5 = pnand %p9411_p0, %p9405_p10 }
 0xcb1   : > { %9023 = vmatmul.mubr.f32.vlgmr.msra.gmra.mxu1 %v6136_v33  ;;  %v6137_v34 = vsub.f32 %v6135_v32, %v6136_v33 }
 0xcb2   : > { %9031 = vmatpush3.msra.mxu1 %v6099_v17  ;;  %9032 = vmatprep.mubr.msk.f32.mxu1 %vm9507_vm1, %v9506_v10 }
 0xcb3   : > { %v6138_v36 = vand.u32 4294901760, %v6137_v34  ;;  %9040 = vmatprep.subr.mxu1 %v9506_v10 }
 0xcb5   : > { %9008 = vmatmul.mubr.f32.vlgmr.msra.gmra.mxu0 %v6138_v36  ;;  %9033 = vmatmul.mubr.f32.vlgmr.msra.gmra.mxu1 %v6134_v31  ;;  %v7004_v36 = vld [vmem:[#allocation5 + $0x18] sm:$0xff] }
 0xcb6   : > { %9016 = vmatpush3.msra.mxu0 %v6176_v26  ;;  %9017 = vmatprep.mubr.msk.f32.mxu0 %vm9507_vm1, %v9506_v10 }
 0xcb7   : > { %9025 = vmatprep.subr.mxu0 %v9506_v10  ;;  %9042 = vmatprep.mubr.msk.f32.mxu1 %vm9507_vm1, %v9506_v10 }
 0xcb8   : > { %9041 = vmatpush3.msra.mxu1 %v6628_v42  ;;  %v7001_v42 = vld [vmem:[#allocation5] sm:$0xff] }
 0xcb9   : > { %9018 = vmatmul.mubr.f32.vlgmr.msra.gmra.mxu0 %v6135_v32  ;;  %9050 = vmatprep.subr.mxu1 %v9506_v10  ;;  %v10339_v43 = vand.u32 4294901760, %v7001_v42 }
 0xcba   : > { %9026 = vmatpush3.msra.mxu0 %v6177_v27  ;;  %9027 = vmatprep.mubr.msk.f32.mxu0 %vm9507_vm1, %v9506_v10  ;;  %v10318_v27 = vpop.permute.xlu1 %6972 }
 0xcbb   : > { %9035 = vmatprep.subr.mxu0 %v9506_v10 }
 0xcbd   : > { %9028 = vmatmul.mubr.f32.vlgmr.msra.gmra.mxu0 %v6134_v31 }
 0xcbe   : > { %9037 = vmatprep.mubr.msk.f32.mxu0 %vm9507_vm1, %v9506_v10  ;;  %9036 = vmatpush3.msra.mxu0 %v6548_v38 }
 0xcbf   : > { %9045 = vmatprep.subr.mxu0 %v9506_v10 }
 0xd6d   : > { %v6216_v45 = vpop.f32.mrf.mxu1 }
 0xd6f   : > { %v9014_v46 = vpop.f32.mrf.mxu1 }
 0xd71   : > { %v6364_v47 = vpop.f32.mrf.mxu1 }
 0xd73   : > { %v9024_v48 = vpop.f32.mrf.mxu1 }
 0xd75   : > { %v6140_v49 = vpop.f32.mrf.mxu0  ;;  %v6510_v35 = vpop.f32.mrf.mxu1 }
 0xd76   : > { %v6217_v53 = vadd.f32 %v6216_v45, %v6140_v49 }
 0xd77   : > { %v9009_v50 = vpop.f32.mrf.mxu0  ;;  %v9034_v52 = vpop.f32.mrf.mxu1 }
 0xd79   : > { %v6290_v54 = vpop.f32.mrf.mxu0 }
 0xd7a   : > { %v6291_v55 = vadd.f32 %v6290_v54, %v6217_v53 }
 0xd7b   : > { %v9019_v56 = vpop.f32.mrf.mxu0 }
 0xd7c   : > { %v6365_v57 = vadd.f32 %v6364_v47, %v6291_v55  ;;  %v10352_v47 = vsub.f32 %v7001_v42, %v10339_v43 }
 0xd7d   : > { %v6438_v58 = vpop.f32.mrf.mxu0 }
 0xd7e   : > { %v6439_v59 = vadd.f32 %v6438_v58, %v6365_v57  ;;  %v7142_v50 = vand.u32 4294901760, %v10352_v47 }
 0xd7f   : > { %v9029_v60 = vpop.f32.mrf.mxu0 }
 0xd80   : > { %v6511_v61 = vadd.f32 %v6510_v35, %v6439_v59  ;;  %v7143_v57 = vsub.f32 %v10352_v47, %v7142_v50 }
 0xd82   : > { %v6515_v62 = vsel %vm1488_vm2, %v6511_v61, 0  ;;  %v7144_v59 = vand.u32 4294901760, %v7143_v57 }
 0xd83   : > { %v6583_v63 = vand.u32 4294901760, %v6515_v62 }
 0xd85   : > { %v6584_v0 = vsub.f32 %v6515_v62, %v6583_v63  ;;  %9043 = vmatmul.mubr.f32.vlgmr.msra.gmra.mxu1 %v6583_v63 }
 0xd86   : > { %9051 = vmatpush3.msra.mxu1 %v6548_v38  ;;  %9052 = vmatprep.mubr.msk.f32.mxu1 %vm9507_vm1, %v9506_v10 }
 0xd87   : > { %v6585_v1 = vand.u32 4294901760, %v6584_v0  ;;  %9060 = vmatprep.subr.mxu1 %v9506_v10 }
 0xd89   : > { %9053 = vmatmul.mubr.f32.vlgmr.msra.gmra.mxu1 %v6585_v1  ;;  %v6586_v3 = vsub.f32 %v6584_v0, %v6585_v1 }
 0xd8a   : > { %9061 = vmatpush3.msra.mxu1 %v6548_v38  ;;  %9062 = vmatprep.mubr.msk.f32.mxu1 %vm9507_vm1, %v9506_v10  ;;  %v7002_v38 = vld [vmem:[#allocation5 + $0x8] sm:$0xff] }
 0xd8b   : > { %v6587_v4 = vand.u32 4294901760, %v6586_v3  ;;  %9076 = vmatprep.subr.mxu1 %v9506_v10  ;;  %v10337_v41 = vand.u32 4294901760, %v7002_v38  ;;  %v8274_v3 = vld [vmem:[%s10727_s9 + $0x4] ss:$0 sm:$0xff] }
 0xd8d   : > { %9038 = vmatmul.mubr.f32.vlgmr.msra.gmra.mxu0 %v6587_v4  ;;  %9063 = vmatmul.mubr.f32.vlgmr.msra.gmra.mxu1 %v6583_v63  ;;  %v10348_v46 = vsub.f32 %v7002_v38, %v10337_v41 }
 0xd8e   : > { %9046 = vmatpush3.msra.mxu0 %v6625_v39  ;;  %9047 = vmatprep.mubr.msk.f32.mxu0 %vm9507_vm1, %v9506_v10  ;;  %v10333_v39 = vand.u32 4294901760, %v7004_v36 }
 0xd8f   : > { %9055 = vmatprep.subr.mxu0 %v9506_v10  ;;  %9084 = vmatprep.mubr.msk.f32.mxu1 %vm9507_vm1, %v9506_v10  ;;  %v7135_v35 = vand.u32 4294901760, %v10348_v46 }
 0xd90   : > { %v10342_v44 = vsub.f32 %v7004_v36, %v10333_v39 }
 0xd91   : > { %9048 = vmatmul.mubr.f32.vlgmr.msra.gmra.mxu0 %v6584_v0  ;;  %v7136_v54 = vsub.f32 %v10348_v46, %v7135_v35  ;;  %v8273_v0 = vld [vmem:[%s10727_s9 + $0x3] ss:$0 sm:$0xff] }
 0xd92   : > { %9056 = vmatpush3.msra.mxu0 %v6626_v40  ;;  %9057 = vmatprep.mubr.msk.f32.mxu0 %vm9507_vm1, %v9506_v10  ;;  %v10335_v40 = vand.u32 4294901760, %v7003_v37  ;;  %v7121_v48 = vand.u32 4294901760, %v10342_v44 }
 0xd93   : > { %9065 = vmatprep.subr.mxu0 %v9506_v10  ;;  %v7137_v58 = vand.u32 4294901760, %v7136_v54 }
 0xd94   : > { %v10345_v45 = vsub.f32 %v7003_v37, %v10335_v40  ;;  %v7122_v52 = vsub.f32 %v10342_v44, %v7121_v48 }
 0xd95   : > { %9058 = vmatmul.mubr.f32.vlgmr.msra.gmra.mxu0 %v6583_v63 }
 0xd96   : > { %9073 = vmatprep.mubr.msk.f32.mxu0 %vm9507_vm1, %v9506_v10  ;;  %9066 = vmatpush3.msra.mxu0 %v10333_v39  ;;  %v7128_v49 = vand.u32 4294901760, %v10345_v45  ;;  %v7123_v55 = vand.u32 4294901760, %v7122_v52 }
 0xd97   : > { %9067 = vmatprep.subr.mxu0 %v9506_v10 }
 0xd98   : > { %9068 = vmatpush3.msra.mxu0 %v10335_v40  ;;  %v7129_v53 = vsub.f32 %v10345_v45, %v7128_v49  ;;  %9077 = vmatpush3.msra.mxu1 %v7123_v55 }
 0xd99   : > { %9069 = vmatprep.subr.mxu0 %v9506_v10  ;;  %9078 = vmatprep.subr.mxu1 %v9506_v10 }
 0xd9a   : > { %9070 = vmatpush3.msra.mxu0 %v10337_v41  ;;  %v7130_v56 = vand.u32 4294901760, %v7129_v53 }
 0xd9b   : > { %9071 = vmatprep.subr.mxu0 %v9506_v10 }
 0xd9c   : > { %9072 = vmatpush3.msra.mxu0 %v10339_v43  ;;  %9079 = vmatpush3.msra.mxu1 %v7130_v56 }
 0xd9d   : > { %9087 = vmatprep.subr.mxu0 %v9506_v10  ;;  %9080 = vmatprep.subr.mxu1 %v9506_v10 }
 0xd9e   : > { %9081 = vmatpush3.msra.mxu1 %v7137_v58 }
 0xd9f   : > { %9082 = vmatprep.subr.mxu1 %v9506_v10 }
 0xda0   : > { %9083 = vmatpush3.msra.mxu1 %v7144_v59 }
 0xda1   : > { %9098 = vmatprep.subr.mxu1 %v9506_v10 }
 0xe45   : > { %v6665_v5 = vpop.f32.mrf.mxu1 }
 0xe47   : > { %v9044_v6 = vpop.f32.mrf.mxu1 }
 0xe49   : > { %v6813_v7 = vpop.f32.mrf.mxu1 }
 0xe4b   : > { %v9054_v8 = vpop.f32.mrf.mxu1 }
 0xe4d   : > { %v6589_v9 = vpop.f32.mrf.mxu0  ;;  %v6959_v11 = vpop.f32.mrf.mxu1 }
 0xe4e   : > { %v6666_v15 = vadd.f32 %v6665_v5, %v6589_v9 }
 0xe4f   : > { %v9039_v12 = vpop.f32.mrf.mxu0  ;;  %v9064_v14 = vpop.f32.mrf.mxu1 }
 0xe50   : > { %v7534_v14 = vld [vmem:[%s10726_s8 + $0x38] sm:$0xff] }
 0xe51   : > { %v6739_v16 = vpop.f32.mrf.mxu0 }
 0xe52   : > { %v6740_v18 = vadd.f32 %v6739_v16, %v6666_v15  ;;  %v10439_v15 = vand.u32 4294901760, %v7534_v14  ;;  %v7533_v16 = vld [vmem:[%s10726_s8 + $0x30] sm:$0xff] }
 0xe53   : > { %v9049_v19 = vpop.f32.mrf.mxu0 }
 0xe54   : > { %v6814_v24 = vadd.f32 %v6813_v7, %v6740_v18  ;;  %v10445_v18 = vsub.f32 %v7534_v14, %v10439_v15  ;;  %v10447_v19 = vand.u32 4294901760, %v7533_v16 }
 0xe55   : > { %v6887_v20 = vpop.f32.mrf.mxu0 }
 0xe56   : > { %v6888_v21 = vadd.f32 %v6887_v20, %v6814_v24  ;;  %v7532_v24 = vld [vmem:[%s10726_s8 + $0x28] sm:$0xff]  ;;  %v7645_v20 = vand.u32 4294901760, %v10445_v18 }
 0xe57   : > { %v9059_v22 = vpop.f32.mrf.mxu0 }
 0xe58   : > { %v6960_v23 = vadd.f32 %v6959_v11, %v6888_v21  ;;  %v10456_v21 = vsub.f32 %v7533_v16, %v10447_v19  ;;  %v10458_v22 = vand.u32 4294901760, %v7532_v24 }
 0xe5a   : > { %v6963_v17 = vadd.f32 %v6960_v23, %v10258_v2  ;;  %v7531_v23 = vld [vmem:[%s10726_s8 + $0x20] sm:$0xff] }
 0xe5c   : > { %v6968_v26 = vadd.f32 %v8272_v25, %v6963_v17  ;;  %v7646_v25 = vsub.f32 %v10445_v18, %v7645_v20  ;;  %v7652_v17 = vand.u32 4294901760, %v10456_v21 }
 0xe5e   : > { %v6969_v28 = vadd.f32 %v9347_v13, %v6968_v26  ;;  %v10470_v26 = vsub.f32 %v7532_v24, %v10458_v22  ;;  %v10472_v13 = vand.u32 4294901760, %v7531_v23 }
 0xe60   : > { %v6975_v29 = vmul.f32 %v10318_v27, %v6969_v28  ;;  %v7530_v28 = vld [vmem:[%s10726_s8 + $0x18] sm:$0xff] }
 0xe62   : > { %6976 = vst.msk [vmem:[%s10322_s10] sm:$0xff] %vm470_vm0, %v6975_v29  ;;  %v7647_v29 = vand.u32 4294901760, %v7646_v25 }
 0xe69   : > { %v10327_v30 = vld [vmem:[%s10322_s10] sm:$0xff] }
 0xe6a   : > { %v6978_v51 = vsel %vm470_vm0, %v10327_v30, 0.0 }
 0xe6b   : > { %6979 = vadd.xlane.f32.xlu1 %v6978_v51  ;;  %v7653_v51 = vsub.f32 %v10456_v21, %v7652_v17 }
 0xef4   : > { %v6980_v2 = vpop.xlane.xlu1 %6979 }
 0xef5   : > { %v6981_v31 = vmul.f32 0.03125, %v6980_v2  ;;  %v7659_v2 = vand.u32 4294901760, %v10470_v26 }
 0xef7   : > { %v6982_v32 = vsub.f32 %v10327_v30, %v6981_v31  ;;  %v10484_v31 = vsub.f32 %v7531_v23, %v10472_v13  ;;  %v7660_v36 = vsub.f32 %v10470_v26, %v7659_v2 }
 0xef9   : > { %v6983_v33 = vmul.f32 %v6982_v32, %v6982_v32  ;;  %v7666_v37 = vand.u32 4294901760, %v10484_v31 }
 0xefb   : > { %v6984_v34 = vsel %vm470_vm0, %v6983_v33, 0.0  ;;  %v7529_v33 = vld [vmem:[%s10726_s8 + $0x10] sm:$0xff]  ;;  %v7667_v42 = vsub.f32 %v10484_v31, %v7666_v37 }
 0xefc   : > { %6985 = vadd.xlane.f32.xlu0 %v6984_v34  ;;  %v7654_v34 = vand.u32 4294901760, %v7653_v51  ;;  %v10497_v38 = vand.u32 4294901760, %v7529_v33 }
 0xf85   : > { %v6986_v60 = vpop.xlane.xlu0 %6985 }
 0xf86   : > { %v6987_v61 = vmul.f32 0.03125, %v6986_v60 }
 0xf88   : > { %v6988_v62 = vadd.f32 1e-06, %v6987_v61 }
 0xf8a   : > { %9341 = vrsqrt.f32 %v6988_v62 }
 0xf97   : > { %v9342_v63 = vpop.eup %9341 }
 0xf98   : > { %v6990_v1 = vmul.f32 %v9342_v63, %v6982_v32  ;;  %v10487_v32 = vand.u32 4294901760, %v7530_v28 }
 0xf9a   : > { %v6995_v4 = vmul.f32 %v8273_v0, %v6990_v1 }
 0xf9c   : > { %v7000_v5 = vadd.f32 %v8274_v3, %v6995_v4 }
 0xf9e   : > { %v7013_v6 = vsel %vm470_vm0, %v7000_v5, 0  ;;  %v8275_v5 = vld [vmem:[%s10725_s7] ss:$0 sm:$0xff] }
 0xf9f   : > { %v7084_v7 = vand.u32 4294901760, %v7013_v6 }
 0xfa1   : > { %v7085_v8 = vsub.f32 %v7013_v6, %v7084_v7  ;;  %9085 = vmatmul.mubr.f32.vlgmr.msra.gmra.mxu1 %v7084_v7 }
 0xfa2   : > { %9099 = vmatpush3.msra.mxu1 %v10333_v39  ;;  %9106 = vmatprep.mubr.msk.f32.mxu1 %vm9507_vm1, %v9506_v10 }
 0xfa3   : > { %9100 = vmatprep.subr.mxu1 %v9506_v10  ;;  %v7086_v9 = vand.u32 4294901760, %v7085_v8 }
 0xfa4   : > { %9101 = vmatpush3.msra.mxu1 %v10335_v40 }
 0xfa5   : > { %9102 = vmatprep.subr.mxu1 %v9506_v10  ;;  %v7087_v11 = vsub.f32 %v7085_v8, %v7086_v9 }
 0xfa6   : > { %9103 = vmatpush3.msra.mxu1 %v10337_v41 }
 0xfa7   : > { %9104 = vmatprep.subr.mxu1 %v9506_v10  ;;  %v7088_v12 = vand.u32 4294901760, %v7087_v11 }
 0xfa8   : > { %9105 = vmatpush3.msra.mxu1 %v10339_v43 }
 0xfa9   : > { %9107 = vmatmul.mubr.f32.vlgmr.msra.gmra.mxu1 %v7086_v9  ;;  %9120 = vmatprep.subr.mxu1 %v9506_v10 }
 0xfaa   : > { %9074 = vmatmul.mubr.f32.vlgmr.msra.gmra.mxu0 %v7088_v12  ;;  %9121 = vmatpush3.msra.mxu1 %v10333_v39  ;;  %v10501_v39 = vsub.f32 %v7530_v28, %v10487_v32 }
 0xfab   : > { %9088 = vmatpush3.msra.mxu0 %v10342_v44  ;;  %9122 = vmatprep.subr.mxu1 %v9506_v10 }
 0xfac   : > { %9089 = vmatprep.subr.mxu0 %v9506_v10  ;;  %9123 = vmatpush3.msra.mxu1 %v10335_v40  ;;  %v7528_v40 = vld [vmem:[%s10726_s8 + $0x8] sm:$0xff] }
 0xfad   : > { %9090 = vmatpush3.msra.mxu0 %v10345_v45  ;;  %9124 = vmatprep.subr.mxu1 %v9506_v10  ;;  %v10513_v44 = vand.u32 4294901760, %v7528_v40  ;;  %v7673_v45 = vand.u32 4294901760, %v10501_v39 }
 0xfae   : > { %9091 = vmatprep.subr.mxu0 %v9506_v10  ;;  %9125 = vmatpush3.msra.mxu1 %v10337_v41  ;;  %v7661_v41 = vand.u32 4294901760, %v7660_v36 }
 0xfaf   : > { %9092 = vmatpush3.msra.mxu0 %v10348_v46  ;;  %9126 = vmatprep.subr.mxu1 %v9506_v10  ;;  %v7527_v46 = vld [vmem:[%s10726_s8] sm:$0xff] }
 0xfb0   : > { %9093 = vmatprep.subr.mxu0 %v9506_v10  ;;  %9095 = vmatprep.mubr.msk.f32.mxu0 %vm9507_vm1, %v9506_v10 }
 0xfb1   : > { %9094 = vmatpush3.msra.mxu0 %v10352_v47  ;;  %9127 = vmatpush3.msra.mxu1 %v10339_v43  ;;  %v10511_v43 = vsub.f32 %v7529_v33, %v10497_v38  ;;  %v7668_v47 = vand.u32 4294901760, %v7667_v42 }
 0xfb2   : > { %9128 = vmatprep.mubr.msk.f32.mxu1 %vm9507_vm1, %v9506_v10  ;;  %9096 = vmatmul.mubr.f32.vlgmr.msra.gmra.mxu0 %v7085_v8 }
 0xfb3   : > { %9109 = vmatprep.subr.mxu0 %v9506_v10  ;;  %9129 = vmatmul.mubr.f32.vlgmr.msra.gmra.mxu1 %v7084_v7 }
 0xfb4   : > { %9110 = vmatpush3.msra.mxu0 %v7121_v48  ;;  %9117 = vmatprep.mubr.msk.f32.mxu0 %vm9507_vm1, %v9506_v10  ;;  %v7680_v48 = vand.u32 4294901760, %v10511_v43 }
 0xfb5   : > { %9111 = vmatprep.subr.mxu0 %v9506_v10  ;;  %9150 = vmatprep.subr.mxu1 %v9506_v10 }
 0xfb6   : > { %9112 = vmatpush3.msra.mxu0 %v7128_v49  ;;  %9166 = vmatprep.mubr.msk.f32.mxu1 %vm9507_vm1, %v9506_v10  ;;  %v10524_v49 = vsub.f32 %v7528_v40, %v10513_v44  ;;  %v7681_v52 = vsub.f32 %v10511_v43, %v7680_v48 }
 0xfb7   : > { %9113 = vmatprep.subr.mxu0 %v9506_v10  ;;  %9151 = vmatpush3.msra.mxu1 %v7647_v29 }
 0xfb8   : > { %9114 = vmatpush3.msra.mxu0 %v7135_v35  ;;  %9152 = vmatprep.subr.mxu1 %v9506_v10  ;;  %v10526_v35 = vand.u32 4294901760, %v7527_v46  ;;  %v7687_v53 = vand.u32 4294901760, %v10524_v49  ;;  %v7682_v56 = vand.u32 4294901760, %v7681_v52 }
 0xfb9   : > { %9115 = vmatprep.subr.mxu0 %v9506_v10  ;;  %9153 = vmatpush3.msra.mxu1 %v7654_v34 }
 0xfba   : > { %9116 = vmatpush3.msra.mxu0 %v7142_v50  ;;  %9154 = vmatprep.subr.mxu1 %v9506_v10  ;;  %v7674_v50 = vsub.f32 %v10501_v39, %v7673_v45  ;;  %v10539_v54 = vsub.f32 %v7527_v46, %v10526_v35  ;;  %v7688_v57 = vsub.f32 %v10524_v49, %v7687_v53 }
 0xfbb   : > { %9118 = vmatmul.mubr.f32.vlgmr.msra.gmra.mxu0 %v7084_v7  ;;  %9131 = vmatprep.subr.mxu0 %v9506_v10 }
 0xfbc   : > { %9147 = vmatprep.mubr.msk.f32.mxu0 %vm9507_vm1, %v9506_v10  ;;  %9132 = vmatpush3.msra.mxu0 %v10439_v15  ;;  %v7675_v55 = vand.u32 4294901760, %v7674_v50  ;;  %v7694_v58 = vand.u32 4294901760, %v10539_v54  ;;  %v7689_v59 = vand.u32 4294901760, %v7688_v57 }
 0xfbd   : > { %9133 = vmatprep.subr.mxu0 %v9506_v10  ;;  %9155 = vmatpush3.msra.mxu1 %v7661_v41 }
 0xfbe   : > { %9134 = vmatpush3.msra.mxu0 %v10447_v19  ;;  %9156 = vmatprep.subr.mxu1 %v9506_v10  ;;  %v7695_v60 = vsub.f32 %v10539_v54, %v7694_v58 }
 0xfbf   : > { %9135 = vmatprep.subr.mxu0 %v9506_v10  ;;  %9157 = vmatpush3.msra.mxu1 %v7668_v47 }
 0xfc0   : > { %9136 = vmatpush3.msra.mxu0 %v10458_v22  ;;  %9158 = vmatprep.subr.mxu1 %v9506_v10  ;;  %v7696_v61 = vand.u32 4294901760, %v7695_v60 }
 0xfc1   : > { %9137 = vmatprep.subr.mxu0 %v9506_v10  ;;  %9159 = vmatpush3.msra.mxu1 %v7675_v55 }
 0xfc2   : > { %9138 = vmatpush3.msra.mxu0 %v10472_v13  ;;  %9160 = vmatprep.subr.mxu1 %v9506_v10 }
 0xfc3   : > { %9139 = vmatprep.subr.mxu0 %v9506_v10  ;;  %9161 = vmatpush3.msra.mxu1 %v7682_v56 }
 0xfc4   : > { %9140 = vmatpush3.msra.mxu0 %v10487_v32  ;;  %9162 = vmatprep.subr.mxu1 %v9506_v10 }
 0xfc5   : > { %9141 = vmatprep.subr.mxu0 %v9506_v10  ;;  %9163 = vmatpush3.msra.mxu1 %v7689_v59 }
 0xfc6   : > { %9142 = vmatpush3.msra.mxu0 %v10497_v38  ;;  %9164 = vmatprep.subr.mxu1 %v9506_v10 }
 0xfc7   : > { %9143 = vmatprep.subr.mxu0 %v9506_v10  ;;  %9165 = vmatpush3.msra.mxu1 %v7696_v61 }
 0xfc8   : > { %9144 = vmatpush3.msra.mxu0 %v10513_v44  ;;  %9188 = vmatprep.subr.mxu1 %v9506_v10 }
 0xfc9   : > { %9145 = vmatprep.subr.mxu0 %v9506_v10 }
 0xfca   : > { %9146 = vmatpush3.msra.mxu0 %v10526_v35 }
 0xfcb   : > { %9169 = vmatprep.subr.mxu0 %v9506_v10 }
0x1061   : > { %v7181_v62 = vpop.f32.mrf.mxu1 }
0x1063   : > { %v9086_v63 = vpop.f32.mrf.mxu1 }
0x1069   : > { %v7338_v0 = vpop.f32.mrf.mxu1 }
0x106a   : > { %v7090_v1 = vpop.f32.mrf.mxu0 }
0x106b   : > { %v9108_v3 = vpop.f32.mrf.mxu1  ;;  %v7091_v6 = vadd.f32 %v8275_v5, %v7090_v1 }
0x106c   : > { %v9075_v4 = vpop.f32.mrf.mxu0 }
0x106d   : > { %v7182_v9 = vadd.f32 %v7181_v62, %v7091_v6 }
0x1072   : > { %v7261_v7 = vpop.f32.mrf.mxu0 }
0x1073   : > { %v7496_v8 = vpop.f32.mrf.mxu1  ;;  %v7262_v14 = vadd.f32 %v7261_v7, %v7182_v9 }
0x1074   : > { %v9097_v11 = vpop.f32.mrf.mxu0 }
0x1075   : > { %v9130_v12 = vpop.f32.mrf.mxu1  ;;  %v7339_v16 = vadd.f32 %v7338_v0, %v7262_v14 }
0x107b   : > { %v7421_v24 = vpop.f32.mrf.mxu0 }
0x107c   : > { %v7422_v23 = vadd.f32 %v7421_v24, %v7339_v16 }
0x107d   : > { %v9119_v25 = vpop.f32.mrf.mxu0 }
0x107e   : > { %v7497_v28 = vadd.f32 %v7496_v8, %v7422_v23 }
0x1080   : > { %v7501_v29 = vmul.f32 0.70710677, %v7497_v28  ;;  %v7500_v3 = vmul.f32 0.5, %v7497_v28 }
0x1082   : > { %v7502_v51 = vand.u32 2147483647, %v7501_v29  ;;  %vm7522_vm4 = vcmp.lt.f32.partialorder %v7501_v29, 0.0 }
0x1084   : > { %v7503_v33 = vmul.f32 0.3275911, %v7502_v51  ;;  %v7516_v36 = vsub.f32 0.0, %v7502_v51 }
0x1086   : > { %v7504_v34 = vadd.f32 1.0, %v7503_v33  ;;  %v7517_v40 = vmul.f32 %v7516_v36, %v7502_v51 }
0x1088   : > { %9343 = vrcp.f32 %v7504_v34  ;;  %v7518_v46 = vmul.f32 1.442695, %v7517_v40 }
0x108a   : > { %9345 = vpow2.f32 %v7518_v46 }
0x1095   : > { %v9344_v41 = vpop.eup %9343 }
0x1096   : > { %v7507_v42 = vmul.f32 1.0614054, %v9344_v41 }
0x1097   : > { %v9346_v61 = vpop.eup %9345 }
0x1098   : > { %v7508_v47 = vadd.f32 -1.4531521, %v7507_v42 }
0x109a   : > { %v7509_v50 = vmul.f32 %v9344_v41, %v7508_v47 }
0x109c   : > { %v7510_v52 = vadd.f32 1.4214138, %v7509_v50 }
0x109e   : > { %v7511_v55 = vmul.f32 %v9344_v41, %v7510_v52 }
0x10a0   : > { %v7512_v56 = vadd.f32 -0.28449672, %v7511_v55 }
0x10a2   : > { %v7513_v57 = vmul.f32 %v9344_v41, %v7512_v56 }
0x10a4   : > { %v7514_v59 = vadd.f32 0.2548296, %v7513_v57 }
0x10a6   : > { %v7515_v60 = vmul.f32 %v9344_v41, %v7514_v59 }
0x10a8   : > { %v7520_v62 = vmul.f32 %v9346_v61, %v7515_v60 }
0x10aa   : > { %v7521_v63 = vsub.f32 1.0, %v7520_v62 }
0x10ac   : > { %v7523_v0 = vsub.f32 0.0, %v7521_v63 }
0x10ae   : > { %v7524_v1 = vsel %vm7522_vm4, %v7523_v0, %v7521_v63 }
0x10af   : > { %v7525_v4 = vadd.f32 1.0, %v7524_v1 }
0x10b1   : > { %v7526_v5 = vmul.f32 %v7525_v4, %v7500_v3 }
0x10b3   : > { %v7541_v6 = vsel %vm7539_vm5, %v7526_v5, 0 }
0x10b4   : > { %v10559_v7 = vand.u32 4294901760, %v7541_v6 }
0x10b6   : > { %v7617_v8 = vsub.f32 %v7541_v6, %v10559_v7  ;;  %9167 = vmatmul.mubr.f32.vlgmr.msra.gmra.mxu1 %v10559_v7 }
0x10b7   : > { %9189 = vmatpush3.msra.mxu1 %v10439_v15  ;;  %9204 = vmatprep.mubr.msk.f32.mxu1 %vm9507_vm1, %v9506_v10 }
0x10b8   : > { %9190 = vmatprep.subr.mxu1 %v9506_v10  ;;  %v7618_v9 = vand.u32 4294901760, %v7617_v8 }
0x10b9   : > { %9191 = vmatpush3.msra.mxu1 %v10447_v19 }
0x10ba   : > { %9192 = vmatprep.subr.mxu1 %v9506_v10  ;;  %v7619_v11 = vsub.f32 %v7617_v8, %v7618_v9 }
0x10bb   : > { %9193 = vmatpush3.msra.mxu1 %v10458_v22 }
0x10bc   : > { %9194 = vmatprep.subr.mxu1 %v9506_v10  ;;  %v7620_v12 = vand.u32 4294901760, %v7619_v11 }
0x10bd   : > { %9195 = vmatpush3.msra.mxu1 %v10472_v13 }
0x10be   : > { %9196 = vmatprep.subr.mxu1 %v9506_v10  ;;  %9148 = vmatmul.mubr.f32.vlgmr.msra.gmra.mxu0 %v7620_v12 }
0x10bf   : > { %9170 = vmatpush3.msra.mxu0 %v10445_v18  ;;  %9197 = vmatpush3.msra.mxu1 %v10487_v32 }
0x10c0   : > { %9171 = vmatprep.subr.mxu0 %v9506_v10  ;;  %9198 = vmatprep.subr.mxu1 %v9506_v10 }
0x10c1   : > { %9172 = vmatpush3.msra.mxu0 %v10456_v21  ;;  %9199 = vmatpush3.msra.mxu1 %v10497_v38 }
0x10c2   : > { %9173 = vmatprep.subr.mxu0 %v9506_v10  ;;  %9200 = vmatprep.subr.mxu1 %v9506_v10 }
0x10c3   : > { %9174 = vmatpush3.msra.mxu0 %v10470_v26  ;;  %9201 = vmatpush3.msra.mxu1 %v10513_v44 }
0x10c4   : > { %9175 = vmatprep.subr.mxu0 %v9506_v10  ;;  %9202 = vmatprep.subr.mxu1 %v9506_v10 }
0x10c5   : > { %9176 = vmatpush3.msra.mxu0 %v10484_v31  ;;  %9203 = vmatpush3.msra.mxu1 %v10526_v35 }
0x10c6   : > { %9177 = vmatprep.subr.mxu0 %v9506_v10  ;;  %9205 = vmatmul.mubr.f32.vlgmr.msra.gmra.mxu1 %v7618_v9 }
0x10c7   : > { %9226 = vmatprep.subr.mxu1 %v9506_v10  ;;  %9178 = vmatpush3.msra.mxu0 %v10501_v39 }
0x10c8   : > { %9227 = vmatpush3.msra.mxu1 %v10439_v15  ;;  %9179 = vmatprep.subr.mxu0 %v9506_v10 }
0x10c9   : > { %9228 = vmatprep.subr.mxu1 %v9506_v10  ;;  %9180 = vmatpush3.msra.mxu0 %v10511_v43 }
0x10ca   : > { %9229 = vmatpush3.msra.mxu1 %v10447_v19  ;;  %9181 = vmatprep.subr.mxu0 %v9506_v10 }
0x10cb   : > { %9230 = vmatprep.subr.mxu1 %v9506_v10  ;;  %9182 = vmatpush3.msra.mxu0 %v10524_v49 }
0x10cc   : > { %9231 = vmatpush3.msra.mxu1 %v10458_v22  ;;  %9183 = vmatprep.subr.mxu0 %v9506_v10 }
0x10cd   : > { %9232 = vmatprep.subr.mxu1 %v9506_v10  ;;  %9184 = vmatpush3.msra.mxu0 %v10539_v54 }
0x10ce   : > { %9185 = vmatprep.mubr.msk.f32.mxu0 %vm9507_vm1, %v9506_v10  ;;  %9233 = vmatpush3.msra.mxu1 %v10472_v13 }
0x10cf   : > { %9186 = vmatmul.mubr.f32.vlgmr.msra.gmra.mxu0 %v7617_v8  ;;  %9207 = vmatprep.subr.mxu0 %v9506_v10 }
0x10d0   : > { %9234 = vmatprep.subr.mxu1 %v9506_v10  ;;  %9208 = vmatpush3.msra.mxu0 %v7645_v20 }
0x10d1   : > { %9235 = vmatpush3.msra.mxu1 %v10487_v32  ;;  %9209 = vmatprep.subr.mxu0 %v9506_v10 }
0x10d2   : > { %9236 = vmatprep.subr.mxu1 %v9506_v10  ;;  %9210 = vmatpush3.msra.mxu0 %v7652_v17 }
0x10d3   : > { %9237 = vmatpush3.msra.mxu1 %v10497_v38  ;;  %9211 = vmatprep.subr.mxu0 %v9506_v10 }
0x10d4   : > { %9238 = vmatprep.subr.mxu1 %v9506_v10  ;;  %9212 = vmatpush3.msra.mxu0 %v7659_v2 }
0x10d5   : > { %9239 = vmatpush3.msra.mxu1 %v10513_v44  ;;  %9213 = vmatprep.subr.mxu0 %v9506_v10 }
0x10d6   : > { %9240 = vmatprep.subr.mxu1 %v9506_v10  ;;  %9214 = vmatpush3.msra.mxu0 %v7666_v37 }
0x10d7   : > { %9241 = vmatpush3.msra.mxu1 %v10526_v35  ;;  %9242 = vmatprep.mubr.msk.f32.mxu1 %vm9507_vm1, %v9506_v10 }
0x10d8   : > { %9215 = vmatprep.subr.mxu0 %v9506_v10  ;;  %9243 = vmatmul.mubr.f32.vlgmr.msra.gmra.mxu1 %v10559_v7 }
0x10d9   : > { %9216 = vmatpush3.msra.mxu0 %v7673_v45  ;;  %9223 = vmatprep.mubr.msk.f32.mxu0 %vm9507_vm1, %v9506_v10 }
0x10da   : > { %9217 = vmatprep.subr.mxu0 %v9506_v10 }
0x10db   : > { %9218 = vmatpush3.msra.mxu0 %v7680_v48 }
0x10dc   : > { %9219 = vmatprep.subr.mxu0 %v9506_v10 }
0x10dd   : > { %9220 = vmatpush3.msra.mxu0 %v7687_v53 }
0x10de   : > { %9221 = vmatprep.subr.mxu0 %v9506_v10 }
0x10df   : > { %9222 = vmatpush3.msra.mxu0 %v7694_v58 }
0x10e0   : > { %9224 = vmatmul.mubr.f32.vlgmr.msra.gmra.mxu0 %v10559_v7 }
0x10e1   : > { %9415 = shalt.err (!%p9412_p5)
}
0x10e2   : > { %s9416_s14 = scalar_lea.hbm %s10648_s23, 512  ;;  %s9420_s17 = scalar_lea.hbm %s10729_s11, 1024 }
0x10e3   : > { %p9417_p9 = scmp.ne.s32.totalorder %s10648_s23, %s9416_s14  ;;  %p9421_p4 = scmp.lt.s32.totalorder %s10648_s23, %s10729_s11 }
0x10e4   : > { %p9422_p6 = scmp.lt.s32.totalorder %s9420_s17, %s9416_s14 }
0x10e5   : > { %p9418_p12 = pnand %p9417_p9, %p10757_p11 }
0x10e6   : > { %p9423_p8 = por %p9422_p6, %p9421_p4 }
0x10e7   : > { %p9419_p1 = pneg %p9418_p12 }
0x10e9   : > { %p9424_p3 = pnand %p9423_p8, %p9419_p1 }
0x10eb   : > { %9427 = shalt.err (!%p9424_p3)
}
0x10ec   : > { %s9517_s29 = smov 128   ;;  %s9518_s16 = smov 8   ;;  %v8276_v26 = vld [vmem:[%s10727_s9 + $0x5] ss:$0 sm:$0xff] }
0x10ed   : > { %9252 = dma.vmem_to_hbm [thread:$0]  (%p10757_p11), %s10650_s25, 512, %s10648_s23, %s8089_s24, %s9517_s29, %s9517_s29, %s9518_s16  }
0x10ee   : > { %s8279_s25 = sshll.u32 %s9601_s21, 7  ;;  %s8102_s23 = sshll.u32 %s10322_s10, 4  ;;  %s8103_s23 = int_to_ptr.vmem [resolvable:$true] %s8102_s23 }
0x10ef   : > { %s10758_s14 = sld [smem:[#allocation19_spill]]  ;;  %s8084_s28 = scalar_lea.sflag [#allocation4], %s9687_s15 }
0x10f0   : > { %s9428_s17 = scalar_lea.vmem %s8103_s23, 128  ;;  %s9519_s27 = smov [#allocation7]  }
0x10f1   : > { %p9429_p7 = scmp.ne.s32.totalorder %s8103_s23, %s9428_s17  ;;  %s9432_s21 = sshll.u32 %s9519_s27, 4  ;;  %s9433_s21 = int_to_ptr.vmem [resolvable:$false] %s9432_s21 }
0x10f2   : > { %s9434_s26 = scalar_lea.vmem %s9433_s21, 256  ;;  %p9435_p13 = scmp.lt.s32.totalorder %s8103_s23, %s9433_s21 }
0x10f3   : > { %p9430_p10 = pnand %p9429_p7, %p10757_p11  ;;  %p9436_p0 = scmp.lt.s32.totalorder %s9434_s26, %s9428_s17 }
0x10f5   : > { %s8100_s22 = scalar_lea.hbm %s10758_s14, %s8279_s25  ;;  %p9431_p2 = pneg %p9430_p10 }
0x10f6   : > { %p9437_p5 = por %p9436_p0, %p9435_p13 }
0x10f8   : > { %p9438_p9 = pnand %p9437_p5, %p9431_p2 }
0x1176   : > { %v7733_v10 = vpop.f32.mrf.mxu1 }
0x1178   : > { %v9168_v15 = vpop.f32.mrf.mxu1 }
0x117e   : > { %v7622_v18 = vpop.f32.mrf.mxu0 }
0x117f   : > { %v7623_v13 = vadd.f32 %v8276_v26, %v7622_v18 }
0x1180   : > { %v9149_v19 = vpop.f32.mrf.mxu0 }
0x1181   : > { %v7734_v31 = vadd.f32 %v7733_v10, %v7623_v13 }
0x1186   : > { %v7902_v20 = vpop.f32.mrf.mxu1 }
0x1188   : > { %v9206_v21 = vpop.f32.mrf.mxu1 }
0x118f   : > { %v7821_v22 = vpop.f32.mrf.mxu0 }
0x1190   : > { %v7822_v37 = vadd.f32 %v7821_v22, %v7734_v31 }
0x1191   : > { %v9187_v17 = vpop.f32.mrf.mxu0 }
0x1192   : > { %v7903_v38 = vadd.f32 %v7902_v20, %v7822_v37 }
0x1198   : > { %v8076_v2 = vpop.f32.mrf.mxu1 }
0x119a   : > { %v9244_v32 = vpop.f32.mrf.mxu1 }
0x11a0   : > { %v7997_v39 = vpop.f32.mrf.mxu0 }
0x11a1   : > { %v7998_v43 = vadd.f32 %v7997_v39, %v7903_v38 }
0x11a2   : > { %v9225_v44 = vpop.f32.mrf.mxu0 }
0x11a3   : > { %v8077_v45 = vadd.f32 %v8076_v2, %v7998_v43 }
0x11a5   : > { %v8080_v48 = vadd.f32 %v8077_v45, %v10327_v30 }
0x11a7   : > { %v8081_v49 = vmul.f32 %v8080_v48, %v10318_v27 }
0x11a9   : > { %8082 = vst.msk [vmem:[%s10322_s10] sm:$0xff] %vm470_vm0, %v8081_v49 }
0x11aa   : > { %9441 = shalt.err (!%p9438_p9)
}
0x11ab   : > { %s9442_s29 = scalar_lea.hbm %s8100_s22, 128  ;;  %s9446_s16 = scalar_lea.hbm %s10758_s14, 256 }
0x11ac   : > { %p9443_p12 = scmp.ne.s32.totalorder %s8100_s22, %s9442_s29  ;;  %p9447_p6 = scmp.lt.s32.totalorder %s8100_s22, %s10758_s14 }
0x11ad   : > { %p9448_p8 = scmp.lt.s32.totalorder %s9446_s16, %s9442_s29 }
0x11ae   : > { %p9444_p1 = pnand %p9443_p12, %p10757_p11 }
0x11af   : > { %p9449_p3 = por %p9448_p8, %p9447_p6 }
0x11b0   : > { %p9445_p4 = pneg %p9444_p1 }
0x11b2   : > { %p9450_p7 = pnand %p9449_p3, %p9445_p4 }
0x11b4   : > { %9453 = shalt.err (!%p9450_p7)
}
0x11b5   : > { %9251 = dma.vmem_to_hbm [thread:$0]  (%p10757_p11), %s8103_s23, 128, %s8100_s22, %s8084_s28  }
0x11b6 PF: > { %s10759_s25 = sld [smem:[#allocation14_spill]]  ;;  %p10762_p2 = scmp.ge.s32.totalorder %s9500_s20, 2 }
0x11b7   : > { %s10760_s24 = sld [smem:[#allocation15_spill]] }
0x11bc   : > { %s8130_s12 = sand.u32 1, %s10759_s25  }
0x11bd   : > { %p10761_p10 = scmp.ne.s32.totalorder %s10760_s24, 0  ;;  %s8131_s17 = scalar_lea.sflag [#allocation4], %s8130_s12 }
0x11bf   : > { %p9264_p13 = pnand %p10762_p2, %p10761_p10 }
0x11c1   : > { %p9265_p0 = pneg %p9264_p13 }
0x11c3   : > { %9479 = dma.done.wait (%p9265_p0), %s8131_s17, 128  }
0x11c4   : > { %9481 = vsyncadd (%p9265_p0), %s8131_s17, 4294967168  ;;  %s8140_s27 = scalar_lea.sflag [#allocation9], %s8130_s12 }
0x11c5   : > { %9483 = dma.done.wait (%p9265_p0), %s8140_s27, 512  }
0x11c6   : > { %9485 = vsyncadd (%p9265_p0), %s8140_s27, 4294966784  ;;  %s10763_s20 = sld [smem:[#allocation16_spill]]  ;;  %s10765_s17 = smov %s9492_s18 }
0x11c7   : > { %s10764_s13 = sld [smem:[#allocation17_spill]]  ;;  %s10766_s18 = smov %s9496_s19 }
0x11cc   : > { %p29_p11 = scmp.ge.s32.totalorder %s10763_s20, 4  }
0x11cd   : > { %s10767_s19 = smov %s10764_s13 }
0x11ce   :  { %31 = sbr.rel (!%p29_p11) target bundleno = 11 (0xb), region = 135 }
0x11d3   :  { %8145 = vsyncpa [#allocation3], 1 }
0x11d4   :  { %8147 = vsyncpa [#allocation3 + $0x1], 1 }
0x11d5   :  { %8148 = vsyncpa [#allocation6], 1 }
0x11d6   :  { %8149 = vsyncpa [#allocation4], 1 }
0x11d7   :  { %8151 = vsyncpa [#allocation4 + $0x1], 1 }
0x11d8   :  { %8152 = vsyncpa [#allocation9], 1 }
0x11d9   :  { %8154 = vsyncpa [#allocation9 + $0x1], 1 }

</bundles_post_ra>
